<compile_context>
chip_gen: v5e
topology: v5e:2x2
jax: 0.10.0
libtpu: 0.0.40
codegen_flags: <defaults>
</compile_context>

<pallas_src>
import functools

import jax
import jax.numpy as jnp
from jax import lax
from jax.experimental import pallas as pl
from jax.experimental.pallas import tpu as pltpu


def line_kernel(first_row_ref, first_full_ref, cen_row_ref, con_full_ref,
                p1_ref, p2_ref, *, pad_cols):
    # Contract the last (D) axis of both operands directly -> no transpose copy before the MXU.
    dn = (((1,), (1,)), ((), ()))

    # Issue both MXU pushes back-to-back so the second matmul's latency hides under the
    # EUP tanh/exp chain of the first (MXU is far from being the binding unit at K=D).
    g1 = lax.dot_general(first_row_ref[...], first_full_ref[...], dn,
                         preferred_element_type=jnp.float32)          # (TM, Np) f32
    g2 = lax.dot_general(cen_row_ref[...], con_full_ref[...], dn,
                         preferred_element_type=jnp.float32)          # (TM, Np) f32

    # ---- first-order proximity: sigmoid(E1_row @ E1_full^T) ----
    # sigmoid(x) == 0.5 * (1 + tanh(x/2)); tanh runs on the EUP (no per-lane divide).
    p1_ref[...] = (0.5 * (1.0 + jnp.tanh(0.5 * g1))).astype(p1_ref.dtype)

    # ---- second-order proximity: row-normalized exp(C_row @ X_full^T) ----
    # NOTE: unstabilized exp, matching the PyTorch reference (no row-max subtraction).
    # TODO(synk): offer an opt-in row-max subtraction for large-logit robustness.
    e2 = jnp.exp(g2)
    down = jnp.sum(e2, axis=1, keepdims=True)                         # (TM, 1)
    if pad_cols:
        # Padded `con` rows are exact zeros, so each padded column contributes exp(0) = 1
        # to the denominator: subtract the constant instead of masking every tile.
        down = down - jnp.float32(pad_cols)
    p2_ref[...] = (e2 * pl.reciprocal(down, approx=True)).astype(p2_ref.dtype)


def _vmem_capacity_bytes():
    try:
        return int(pltpu.get_tpu_info().vmem_capacity_bytes)
    except Exception:
        # Conservative fallback: v7x per-TC VMEM.
        return 64 * 1024 * 1024


def _step_bytes(tm, n_pad, d, out_elem_bytes, full_buffers):
    """Resident VMEM for one grid step at row-tile TM."""
    out_bufs = 2 * 2 * tm * n_pad * out_elem_bytes        # 2 outputs x 2 buffers
    temps = 4 * tm * n_pad * 4                             # g1, g2, e2, scaled p2 (f32)
    row_in = 2 * 2 * tm * d * 2                            # 2 row inputs x 2 buffers (bf16)
    full_in = 2 * full_buffers * n_pad * d * 2             # 2 full inputs (bf16)
    return out_bufs + temps + row_in + full_in


def _pick_tile_rows(n_pad, d, out_elem_bytes, budget):
    """Largest row tile (multiple of 128, divisor of n_pad) fitting the VMEM budget,
    while keeping >= 2 row tiles so both v7x TensorCores get work (costs at most one
    extra ~0.35us grid step on single-TC v5e/v6e)."""
    m = n_pad // 128
    best = 128
    for k in range(1, m + 1):
        if m % k:
            continue
        tm = 128 * k
        if n_pad >= 256 and tm > n_pad // 2:
            continue
        if _step_bytes(tm, n_pad, d, out_elem_bytes, full_buffers=2) <= budget and tm > best:
            best = tm
    return best


def line_forward(first_emb, cen_emb, con_emb, *, out_dtype=jnp.float32):
    """first_emb / cen_emb / con_emb: (N, D) float32 gathered embeddings.

    out_dtype=jnp.bfloat16 halves the dominant N^2 output HBM traffic (biggest relative win
    on v5e/v6e) at the cost of tighter numerics; default stays float32.
    """
    n, d = first_emb.shape

    # Lane-dense outputs: pad the node batch up to a multiple of 128.
    n_pad = ((n + 127) // 128) * 128
    pad_cols = n_pad - n
    out_elem_bytes = jnp.dtype(out_dtype).itemsize

    vmem_cap = _vmem_capacity_bytes()
    budget = (vmem_cap * 3) // 4                       # leave compiler headroom
    tm = _pick_tile_rows(n_pad, d, out_elem_bytes, budget)
    # TODO(synk): column-tile the outputs (TM, TN) with an "arbitrary" reduction axis and a
    # VMEM partial-sum scratch for the p2 denominator once (128, n_pad) tiles no longer fit
    # VMEM (n_pad of several thousand on v7x's 64 MiB).

    def prep(x):
        if pad_cols:
            x = jnp.pad(x, ((0, pad_cols), (0, 0)))    # exact zeros -> exp(0)=1 correction holds
        return x.astype(jnp.bfloat16)                  # bf16 MXU inputs -> half the HBM traffic

    first = prep(first_emb)
    cen = prep(cen_emb)
    con = prep(con_emb)

    need = _step_bytes(tm, n_pad, d, out_elem_bytes, full_buffers=2)
    vmem_limit = int(min(vmem_cap - (4 << 20), need + (8 << 20)))
    vmem_limit = max(vmem_limit, 16 << 20)

    kernel = functools.partial(line_kernel, pad_cols=pad_cols)

    def run(single_buffer_full):
        row_spec = pl.BlockSpec((tm, d), lambda i: (i, 0))
        if single_buffer_full:
            # Constant index_map -> never re-DMAed; single buffer halves its VMEM residency.
            full_spec = pl.BlockSpec((n_pad, d), lambda i: (0, 0),
                                     pipeline_mode=pl.Buffered(1))
        else:
            full_spec = pl.BlockSpec((n_pad, d), lambda i: (0, 0))
        out_spec = pl.BlockSpec((tm, n_pad), lambda i: (i, 0))
        return pl.pallas_call(
            kernel,
            out_shape=(jax.ShapeDtypeStruct((n_pad, n_pad), out_dtype),
                       jax.ShapeDtypeStruct((n_pad, n_pad), out_dtype)),
            grid=(n_pad // tm,),
            in_specs=[row_spec, full_spec, row_spec, full_spec],
            out_specs=(out_spec, out_spec),
            compiler_params=pltpu.CompilerParams(
                dimension_semantics=("parallel",),
                vmem_limit_bytes=vmem_limit),
        )(first, first, cen, con)

    try:
        p1, p2 = run(single_buffer_full=True)
    except Exception:
        # pl.Buffered(1) not accepted on this jax build -> default double buffering.
        p1, p2 = run(single_buffer_full=False)

    if pad_cols:
        p1 = p1[:n, :n]
        p2 = p2[:n, :n]
    return p1, p2


class LinePallas:
    """Deterministic stand-in for the PyTorch Line module (forward only)."""

    def __init__(self, node_nums, embed_size, key):
        k1, k2, k3 = jax.random.split(key, 3)
        # nn.Embedding default init ~ N(0, 1)
        self.first_order_embedding = jax.random.normal(
            k1, (node_nums, embed_size), dtype=jnp.float32)
        self.second_order_center_embedding = jax.random.normal(
            k2, (node_nums, embed_size), dtype=jnp.float32)
        self.second_order_contex_embedding = jax.random.normal(
            k3, (node_nums, embed_size), dtype=jnp.float32)

    def forward(self, nodes):
        nodes = jnp.asarray(nodes, dtype=jnp.int32)
        # TODO(synk): fuse the embedding gather into the kernel (scalar-prefetched node ids +
        # pl.Element row indexing / manual DMA gather) instead of materializing three (N, D)
        # gathered arrays in HBM.
        first_order_emb = jnp.take(self.first_order_embedding, nodes, axis=0)
        second_order_cenemb = jnp.take(self.second_order_center_embedding, nodes, axis=0)
        second_order_conemb = jnp.take(self.second_order_contex_embedding, nodes, axis=0)
        return line_forward(first_order_emb, second_order_cenemb, second_order_conemb)


if __name__ == "__main__":
    node_nums = 512
    embed_size = 32
    batch_nodes = 200      # not a multiple of 128 -> exercises padding + denominator correction

    key = jax.random.PRNGKey(0)
    model = LinePallas(node_nums, embed_size, key)

    # deterministic node indices
    nodes = (jnp.arange(batch_nodes, dtype=jnp.int32) * 7) % node_nums

    p1, p2 = model.forward(nodes)
    jax.block_until_ready((p1, p2))

    # Reference in plain JAX, using the same bf16-quantized inputs the kernel sees.
    # (bf16 quantization of the MXU inputs is a deliberate kernel choice; the true f32
    # PyTorch semantics differ by the quantization error of the embeddings.)
    def q(x):
        return x.astype(jnp.bfloat16).astype(jnp.float32)

    e1 = q(jnp.take(model.first_order_embedding, nodes, axis=0))
    c = q(jnp.take(model.second_order_center_embedding, nodes, axis=0))
    x = q(jnp.take(model.second_order_contex_embedding, nodes, axis=0))
    ref_p1 = 1.0 / (1.0 + jnp.exp(-(e1 @ e1.T)))
    s = jnp.exp(c @ x.T)
    ref_p2 = s / jnp.sum(s, axis=1, keepdims=True)

    assert p1.shape == (batch_nodes, batch_nodes)
    assert p2.shape == (batch_nodes, batch_nodes)
    # Tolerances account for bf16 MXU accumulation order and the approximate EUP reciprocal.
    assert jnp.allclose(p1, ref_p1, atol=2e-3, rtol=2e-3), float(jnp.max(jnp.abs(p1 - ref_p1)))
    assert jnp.allclose(p2, ref_p2, atol=2e-3, rtol=2e-3), float(jnp.max(jnp.abs(p2 - ref_p2)))

    print("KERNEL_OK")
</pallas_src>

<mosaic_0001>
module attributes {stable_mosaic.version = 11 : i64} {
  func.func @line_kernel(%arg0: i32, %arg1: memref<128x32xbf16, #tpu.memory_space<vmem>>, %arg2: memref<256x32xbf16, #tpu.memory_space<vmem>>, %arg3: memref<128x32xbf16, #tpu.memory_space<vmem>>, %arg4: memref<256x32xbf16, #tpu.memory_space<vmem>>, %arg5: memref<128x256xf32, #tpu.memory_space<vmem>>, %arg6: memref<128x256xf32, #tpu.memory_space<vmem>>) attributes {dimension_semantics = [#tpu.dimension_semantics<parallel>], iteration_bounds = array<i64: 2>, scalar_prefetch = 0 : i64, scratch_operands = 0 : i64, tpu.core_type = #tpu.core_type<tc>, window_params = [{transform_indices = @transform_0, window_bounds = array<i64: 128, 32>}, {pipeline_mode = #tpu.pipeline_mode<synchronous>, transform_indices = @transform_1, window_bounds = array<i64: 256, 32>}, {transform_indices = @transform_2, window_bounds = array<i64: 128, 32>}, {pipeline_mode = #tpu.pipeline_mode<synchronous>, transform_indices = @transform_3, window_bounds = array<i64: 256, 32>}, {transform_indices = @transform_4, window_bounds = array<i64: 128, 256>}, {transform_indices = @transform_5, window_bounds = array<i64: 128, 256>}]} {
    %c0 = arith.constant 0 : index
    %c0_0 = arith.constant 0 : index
    %0 = vector.load %arg1[%c0, %c0_0] : memref<128x32xbf16, #tpu.memory_space<vmem>>, vector<128x32xbf16>
    %c0_1 = arith.constant 0 : index
    %c0_2 = arith.constant 0 : index
    %1 = vector.load %arg2[%c0_1, %c0_2] : memref<256x32xbf16, #tpu.memory_space<vmem>>, vector<256x32xbf16>
    %cst = arith.constant dense<0.000000e+00> : vector<128x256xf32>
    %2 = tpu.matmul %0, %1, %cst {dimension_numbers = #tpu.dot_dimension_numbers<[1], [1], [0], [0], [0, 0, 1, 0], [], []>} : vector<128x32xbf16>, vector<256x32xbf16>, vector<128x256xf32> -> vector<128x256xf32>
    %c0_3 = arith.constant 0 : index
    %c0_4 = arith.constant 0 : index
    %3 = vector.load %arg3[%c0_3, %c0_4] : memref<128x32xbf16, #tpu.memory_space<vmem>>, vector<128x32xbf16>
    %c0_5 = arith.constant 0 : index
    %c0_6 = arith.constant 0 : index
    %4 = vector.load %arg4[%c0_5, %c0_6] : memref<256x32xbf16, #tpu.memory_space<vmem>>, vector<256x32xbf16>
    %cst_7 = arith.constant dense<0.000000e+00> : vector<128x256xf32>
    %5 = tpu.matmul %3, %4, %cst_7 {dimension_numbers = #tpu.dot_dimension_numbers<[1], [1], [0], [0], [0, 0, 1, 0], [], []>} : vector<128x32xbf16>, vector<256x32xbf16>, vector<128x256xf32> -> vector<128x256xf32>
    %cst_8 = arith.constant 5.000000e-01 : f32
    %6 = vector.broadcast %cst_8 : f32 to vector<128x256xf32>
    %7 = arith.mulf %6, %2 : vector<128x256xf32>
    %8 = math.tanh %7 : vector<128x256xf32>
    %cst_9 = arith.constant 1.000000e+00 : f32
    %9 = vector.broadcast %cst_9 : f32 to vector<128x256xf32>
    %10 = arith.addf %9, %8 : vector<128x256xf32>
    %cst_10 = arith.constant 5.000000e-01 : f32
    %11 = vector.broadcast %cst_10 : f32 to vector<128x256xf32>
    %12 = arith.mulf %11, %10 : vector<128x256xf32>
    %c0_11 = arith.constant 0 : index
    %c0_12 = arith.constant 0 : index
    %13 = vector.load %arg5[%c0_11, %c0_12] : memref<128x256xf32, #tpu.memory_space<vmem>>, vector<128x256xf32>
    tpu.vector_store %arg5[%c0_11, %c0_12], %12 {strides = array<i32>} : memref<128x256xf32, #tpu.memory_space<vmem>>, vector<128x256xf32>,
    %14 = math.exp %5 : vector<128x256xf32>
    %cst_13 = arith.constant dense<0.000000e+00> : vector<128xf32>
    %15 = vector.multi_reduction <add>, %14, %cst_13 [1] : vector<128x256xf32> to vector<128xf32>
    %16 = vector.shape_cast %15 : vector<128xf32> to vector<128x1xf32>
    %cst_14 = arith.constant 5.600000e+01 : f32
    %17 = vector.broadcast %cst_14 : f32 to vector<128x1xf32>
    %18 = arith.subf %16, %17 : vector<128x1xf32>
    %19 = tpu.reciprocal %18 {approx = true} : vector<128x1xf32> -> vector<128x1xf32>
    %20 = vector.broadcast %19 : vector<128x1xf32> to vector<128x256xf32>
    %21 = arith.mulf %14, %20 : vector<128x256xf32>
    %c0_15 = arith.constant 0 : index
    %c0_16 = arith.constant 0 : index
    %22 = vector.load %arg6[%c0_15, %c0_16] : memref<128x256xf32, #tpu.memory_space<vmem>>, vector<128x256xf32>
    tpu.vector_store %arg6[%c0_15, %c0_16], %21 {strides = array<i32>} : memref<128x256xf32, #tpu.memory_space<vmem>>, vector<128x256xf32>,
    return
  }
  func.func @transform_0(%arg0: i32) -> (i32, i32) {
    %c0_i32 = arith.constant 0 : i32
    %c0_i32_0 = arith.constant 0 : i32
    return %arg0, %c0_i32 : i32, i32
  }
  func.func @transform_1(%arg0: i32) -> (i32, i32) {
    %c0_i32 = arith.constant 0 : i32
    %c0_i32_0 = arith.constant 0 : i32
    %c0_i32_1 = arith.constant 0 : i32
    return %c0_i32, %c0_i32_0 : i32, i32
  }
  func.func @transform_2(%arg0: i32) -> (i32, i32) {
    %c0_i32 = arith.constant 0 : i32
    %c0_i32_0 = arith.constant 0 : i32
    return %arg0, %c0_i32 : i32, i32
  }
  func.func @transform_3(%arg0: i32) -> (i32, i32) {
    %c0_i32 = arith.constant 0 : i32
    %c0_i32_0 = arith.constant 0 : i32
    %c0_i32_1 = arith.constant 0 : i32
    return %c0_i32, %c0_i32_0 : i32, i32
  }
  func.func @transform_4(%arg0: i32) -> (i32, i32) {
    %c0_i32 = arith.constant 0 : i32
    %c0_i32_0 = arith.constant 0 : i32
    return %arg0, %c0_i32 : i32, i32
  }
  func.func @transform_5(%arg0: i32) -> (i32, i32) {
    %c0_i32 = arith.constant 0 : i32
    %c0_i32_0 = arith.constant 0 : i32
    return %arg0, %c0_i32 : i32, i32
  }
}

module attributes {stable_mosaic.version = 11 : i64} {
  func.func @line_kernel(%arg0: i32, %arg1: memref<128x32xbf16, #tpu.memory_space<vmem>>, %arg2: memref<256x32xbf16, #tpu.memory_space<vmem>>, %arg3: memref<128x32xbf16, #tpu.memory_space<vmem>>, %arg4: memref<256x32xbf16, #tpu.memory_space<vmem>>, %arg5: memref<128x256xf32, #tpu.memory_space<vmem>>, %arg6: memref<128x256xf32, #tpu.memory_space<vmem>>) attributes {dimension_semantics = [#tpu.dimension_semantics<parallel>], iteration_bounds = array<i64: 2>, scalar_prefetch = 0 : i64, scratch_operands = 0 : i64, tpu.core_type = #tpu.core_type<tc>, window_params = [{transform_indices = @transform_0, window_bounds = array<i64: 128, 32>}, {pipeline_mode = #tpu.pipeline_mode<synchronous>, transform_indices = @transform_1, window_bounds = array<i64: 256, 32>}, {transform_indices = @transform_2, window_bounds = array<i64: 128, 32>}, {pipeline_mode = #tpu.pipeline_mode<synchronous>, transform_indices = @transform_3, window_bounds = array<i64: 256, 32>}, {transform_indices = @transform_4, window_bounds = array<i64: 128, 256>}, {transform_indices = @transform_5, window_bounds = array<i64: 128, 256>}]} {
    %c0 = arith.constant 0 : index
    %c0_0 = arith.constant 0 : index
    %0 = vector.load %arg1[%c0, %c0_0] : memref<128x32xbf16, #tpu.memory_space<vmem>>, vector<128x32xbf16>
    %c0_1 = arith.constant 0 : index
    %c0_2 = arith.constant 0 : index
    %1 = vector.load %arg2[%c0_1, %c0_2] : memref<256x32xbf16, #tpu.memory_space<vmem>>, vector<256x32xbf16>
    %cst = arith.constant dense<0.000000e+00> : vector<128x256xf32>
    %2 = tpu.matmul %0, %1, %cst {dimension_numbers = #tpu.dot_dimension_numbers<[1], [1], [0], [0], [0, 0, 1, 0], [], []>} : vector<128x32xbf16>, vector<256x32xbf16>, vector<128x256xf32> -> vector<128x256xf32>
    %c0_3 = arith.constant 0 : index
    %c0_4 = arith.constant 0 : index
    %3 = vector.load %arg3[%c0_3, %c0_4] : memref<128x32xbf16, #tpu.memory_space<vmem>>, vector<128x32xbf16>
    %c0_5 = arith.constant 0 : index
    %c0_6 = arith.constant 0 : index
    %4 = vector.load %arg4[%c0_5, %c0_6] : memref<256x32xbf16, #tpu.memory_space<vmem>>, vector<256x32xbf16>
    %cst_7 = arith.constant dense<0.000000e+00> : vector<128x256xf32>
    %5 = tpu.matmul %3, %4, %cst_7 {dimension_numbers = #tpu.dot_dimension_numbers<[1], [1], [0], [0], [0, 0, 1, 0], [], []>} : vector<128x32xbf16>, vector<256x32xbf16>, vector<128x256xf32> -> vector<128x256xf32>
    %cst_8 = arith.constant 5.000000e-01 : f32
    %6 = vector.broadcast %cst_8 : f32 to vector<128x256xf32>
    %7 = arith.mulf %6, %2 : vector<128x256xf32>
    %8 = math.tanh %7 : vector<128x256xf32>
    %cst_9 = arith.constant 1.000000e+00 : f32
    %9 = vector.broadcast %cst_9 : f32 to vector<128x256xf32>
    %10 = arith.addf %9, %8 : vector<128x256xf32>
    %cst_10 = arith.constant 5.000000e-01 : f32
    %11 = vector.broadcast %cst_10 : f32 to vector<128x256xf32>
    %12 = arith.mulf %11, %10 : vector<128x256xf32>
    %c0_11 = arith.constant 0 : index
    %c0_12 = arith.constant 0 : index
    %13 = vector.load %arg5[%c0_11, %c0_12] : memref<128x256xf32, #tpu.memory_space<vmem>>, vector<128x256xf32>
    tpu.vector_store %arg5[%c0_11, %c0_12], %12 {strides = array<i32>} : memref<128x256xf32, #tpu.memory_space<vmem>>, vector<128x256xf32>,
    %14 = math.exp %5 : vector<128x256xf32>
    %cst_13 = arith.constant dense<0.000000e+00> : vector<128xf32>
    %15 = vector.multi_reduction <add>, %14, %cst_13 [1] : vector<128x256xf32> to vector<128xf32>
    %16 = vector.shape_cast %15 : vector<128xf32> to vector<128x1xf32>
    %cst_14 = arith.constant 5.600000e+01 : f32
    %17 = vector.broadcast %cst_14 : f32 to vector<128x1xf32>
    %18 = arith.subf %16, %17 : vector<128x1xf32>
    %19 = tpu.reciprocal %18 {approx = true} : vector<128x1xf32> -> vector<128x1xf32>
    %20 = vector.broadcast %19 : vector<128x1xf32> to vector<128x256xf32>
    %21 = arith.mulf %14, %20 : vector<128x256xf32>
    %c0_15 = arith.constant 0 : index
    %c0_16 = arith.constant 0 : index
    %22 = vector.load %arg6[%c0_15, %c0_16] : memref<128x256xf32, #tpu.memory_space<vmem>>, vector<128x256xf32>
    tpu.vector_store %arg6[%c0_15, %c0_16], %21 {strides = array<i32>} : memref<128x256xf32, #tpu.memory_space<vmem>>, vector<128x256xf32>,
    return
  }
  func.func @transform_0(%arg0: i32) -> (i32, i32) {
    %c0_i32 = arith.constant 0 : i32
    %c0_i32_0 = arith.constant 0 : i32
    return %arg0, %c0_i32 : i32, i32
  }
  func.func @transform_1(%arg0: i32) -> (i32, i32) {
    %c0_i32 = arith.constant 0 : i32
    %c0_i32_0 = arith.constant 0 : i32
    %c0_i32_1 = arith.constant 0 : i32
    return %c0_i32, %c0_i32_0 : i32, i32
  }
  func.func @transform_2(%arg0: i32) -> (i32, i32) {
    %c0_i32 = arith.constant 0 : i32
    %c0_i32_0 = arith.constant 0 : i32
    return %arg0, %c0_i32 : i32, i32
  }
  func.func @transform_3(%arg0: i32) -> (i32, i32) {
    %c0_i32 = arith.constant 0 : i32
    %c0_i32_0 = arith.constant 0 : i32
    %c0_i32_1 = arith.constant 0 : i32
    return %c0_i32, %c0_i32_0 : i32, i32
  }
  func.func @transform_4(%arg0: i32) -> (i32, i32) {
    %c0_i32 = arith.constant 0 : i32
    %c0_i32_0 = arith.constant 0 : i32
    return %arg0, %c0_i32 : i32, i32
  }
  func.func @transform_5(%arg0: i32) -> (i32, i32) {
    %c0_i32 = arith.constant 0 : i32
    %c0_i32_0 = arith.constant 0 : i32
    return %arg0, %c0_i32 : i32, i32
  }
}

</mosaic_0001>

<bundles_post_ra>
// kernel: tpu_custom_call.1
= control target key start
LH: loop header
LB: loop body
LE: loop exit
PB: predicated region body
PF: predicated region fallthrough
CT: control target
= control target key end

     0   :  { %11 = vsyncpa [#allocation3], 0  ;;  %s2602_s0 = inlined_call_operand.vmem [shape: bf16[256,32], index: 0, kind: input, shape index: {}]   ;;  %s2603_s1 = inlined_call_operand.vmem [shape: bf16[256,32], index: 1, kind: input, shape index: {}]   ;;  %s2604_s2 = inlined_call_operand.vmem [shape: bf16[256,32], index: 2, kind: input, shape index: {}]   ;;  %s2605_s3 = inlined_call_operand.vmem [shape: bf16[256,32], index: 3, kind: input, shape index: {}]   ;;  %s2606_s4 = inlined_call_operand.hbm [shape: f32[256,256], index: 4, kind: output, shape index: {0}]   ;;  %s2607_s5 = inlined_call_operand.hbm [shape: f32[256,256], index: 5, kind: output, shape index: {1}]  }
   0x1   :  { %13 = vsyncpa [#allocation3 + $0x1], 0 }
   0x2   :  { %14 = vsyncpa [#allocation5], 0 }
   0x3   :  { %16 = vsyncpa [#allocation5 + $0x1], 0  ;;  %s2098_s18 = smov 0   ;;  %s2100_s19 = smov 0  }
   0x4   :  { %s2102_s20 = smov 0   ;;  %s2104_s21 = smov 0  }
   0x5 LB: > { %s2119_s22 = sadd.s32 4294967295, %s2064_s21   ;;  %s1452_s23 = sadd.s32 4294967294, %s2064_s21   ;;  %s2064_s21 = sphi %s2104_s21, %s2613_s21   ;;  %s2060_s20 = sphi %s2102_s20, %s2612_s20   ;;  %s2056_s19 = sphi %s2100_s19, %s2611_s19   ;;  %s2052_s18 = sphi %s2098_s18, %s2610_s18  }
   0x6   : > { %s2123_s24 = sadd.s32 1, %s2064_s21   ;;  %s123_s25 = sadd.s32 1, %s2060_s20 }
   0x7   : > { %s120_s26 = ssub.s32 %s2064_s21, %s2123_s24  ;;  %p133_p0 = scmp.ne.s32.totalorder %s2060_s20, %s2056_s19 }
   0x8   : > { %p121_p1 = scmp.eq.s32.totalorder %s120_s26, 0  ;;  %p134_p2 = scmp.eq.s32.totalorder %s2119_s22, 1 }
   0x9   : > { %p139_p3 = scmp.ne.s32.totalorder %s2056_s19, %s2052_s18  ;;  %p140_p4 = scmp.eq.s32.totalorder %s1452_s23, 1 }
   0xa   : > { %s2134_s27 = scalar_select %p121_p1, %s2060_s20, %s123_s25  }
   0xb   : > { %p2136_p5 = por %p134_p2, %p133_p0  ;;  %p2140_p6 = por %p140_p4, %p139_p3 }
   0xc   : > { %p1455_p7 = scmp.ge.s32.totalorder %s2064_s21, 1  ;;  %p208_p8 = scmp.lt.s32.totalorder %s2064_s21, 3 }
   0xe   : > { %p209_p9 = pnand %p1455_p7, %p208_p8 }
   0xf   : > { %s1458_s17 = sshll.u32 (!%p209_p9), %s2119_s22, 4  ;;  %s1761_s30 = sshll.u32 (!%p209_p9), %s2119_s22, 8 }
  0x10   : > { %212 = sbr.rel (%p209_p9) target bundleno = 481 (0x1e1), region = 36  ;;  %p247_p10 = scmp.lt.s32.totalorder (!%p209_p9), %s1458_s17, 31 }
  0x11   : > { %s1323_s10 = scalar_lea.hbm (!%p209_p9), %s2606_s4, %s1761_s30 }
  0x12   : > { %s1326_s12 = sshll.u32 (!%p209_p9), %s1323_s10, 4  ;;  %s1327_s12 = int_to_ptr.hbm [resolvable:$true] %s1326_s12 }
  0x13   : > { %s1984_s14 = sshra.s32 (!%p209_p9), %s1327_s12, 4  ;;  %s1985_s14 = int_to_ptr.hbm [resolvable:$true] %s1984_s14 }
  0x14   : > { %s1986_s15 = scalar_lea.hbm (!%p209_p9), %s1985_s14, 256  ;;  %p1991_p0 = scmp.lt.s32.totalorder (!%p209_p9), %s1985_s14, %s2606_s4 }
  0x15   : > { %vm428_vm0 = vcmask 261120   ;;  %v1751_v0 = vld [vmem:[%s2605_s3 + $0x38] sm:$0xff]  ;;  %v1750_v4 = vld [vmem:[%s2605_s3 + $0x30] sm:$0xff]  ;;  %v1749_v8 = vld [vmem:[%s2605_s3 + $0x28] sm:$0xff]  ;;  %s2615_s17 = smov (!%p247_p10, %s1458_s17), 31  ;;  %p1987_p11 = scmp.ne.s32.totalorder %s1985_s14, %s1986_s15 }
  0x16   : > { %v1759_v1 = vld [vmem:[%s2605_s3 + $0x78] sm:$0xff]  ;;  %v813_v2 = vsel %vm428_vm0, %v1751_v0, 0  ;;  %v1758_v5 = vld [vmem:[%s2605_s3 + $0x70] sm:$0xff]  ;;  %v810_v6 = vsel %vm428_vm0, %v1750_v4, 0  ;;  %v1757_v9 = vld [vmem:[%s2605_s3 + $0x68] sm:$0xff]  ;;  %v807_v10 = vsel %vm428_vm0, %v1749_v8, 0 }
  0x17   : > { %v837_v3 = vsel %vm428_vm0, %v1759_v1, 0  ;;  %839 = vmatpush.bf16.xpose.msra.mxu2 %v813_v2  ;;  %v834_v7 = vsel %vm428_vm0, %v1758_v5, 0  ;;  %v831_v11 = vsel %vm428_vm0, %v1757_v9, 0  ;;  %v1748_v12 = vld [vmem:[%s2605_s3 + $0x20] sm:$0xff]  ;;  %v1747_v16 = vld [vmem:[%s2605_s3 + $0x18] sm:$0xff]  ;;  %v1746_v20 = vld [vmem:[%s2605_s3 + $0x10] sm:$0xff]  ;;  %p1988_p12 = pnand %p1987_p11, %p2136_p5 }
  0x18   : > { %888 = vmatpush.bf16.xpose.msra.mxu3 %v837_v3  ;;  %v1756_v13 = vld [vmem:[%s2605_s3 + $0x60] sm:$0xff]  ;;  %v804_v14 = vsel %vm428_vm0, %v1748_v12, 0  ;;  %v1755_v17 = vld [vmem:[%s2605_s3 + $0x58] sm:$0xff]  ;;  %v801_v18 = vsel %vm428_vm0, %v1747_v16, 0  ;;  %v1754_v21 = vld [vmem:[%s2605_s3 + $0x50] sm:$0xff]  ;;  %v798_v22 = vsel %vm428_vm0, %v1746_v20, 0 }
  0x19   : > { %v828_v15 = vsel %vm428_vm0, %v1756_v13, 0  ;;  %v825_v19 = vsel %vm428_vm0, %v1755_v17, 0  ;;  %v822_v23 = vsel %vm428_vm0, %v1754_v21, 0  ;;  %v1745_v24 = vld [vmem:[%s2605_s3 + $0x8] sm:$0xff]  ;;  %v1744_v28 = vld [vmem:[%s2605_s3] sm:$0xff]  ;;  %s1459_s6 = sshll.u32 %s2615_s17, 2  ;;  %p1989_p13 = pneg %p1988_p12 }
  0x1a   : > { %v1753_v25 = vld [vmem:[%s2605_s3 + $0x48] sm:$0xff]  ;;  %v795_v26 = vsel %vm428_vm0, %v1745_v24, 0  ;;  %v1752_v29 = vld [vmem:[%s2605_s3 + $0x40] sm:$0xff]  ;;  %v792_v30 = vsel %vm428_vm0, %v1744_v28, 0  ;;  %s2219_s9 = scalar_lea.vmem %s2604_s2, %s1459_s6  ;;  %v1727_v34 = vld [vmem:[%s2603_s1 + $0x38] sm:$0xff]  ;;  %s2308_s25 = scalar_lea.vmem %s2602_s0, %s1459_s6 }
  0x1b   : > { %v819_v27 = vsel %vm428_vm0, %v1753_v25, 0  ;;  %v816_v31 = vsel %vm428_vm0, %v1752_v29, 0  ;;  %v1736_v32 = vld [vmem:[%s2219_s9] sm:$0xff]  ;;  %v1737_v33 = vld [vmem:[%s2219_s9 + $0x8] sm:$0xff]  ;;  %v1735_v35 = vld [vmem:[%s2603_s1 + $0x78] sm:$0xff]  ;;  %v475_v36 = vsel %vm428_vm0, %v1727_v34, 0 }
  0x1c   : > { %v499_v37 = vsel %vm428_vm0, %v1735_v35, 0  ;;  %501 = vmatpush.bf16.xpose.msra.mxu0 %v475_v36  ;;  %v1738_v38 = vld [vmem:[%s2219_s9 + $0x10] sm:$0xff]  ;;  %v1725_v43 = vld [vmem:[%s2603_s1 + $0x28] sm:$0xff]  ;;  %v1739_v47 = vld [vmem:[%s2219_s9 + $0x18] sm:$0xff]  ;;  %s2405_s17 = sand.u32 1, %s2056_s19  }
  0x1d   : > { %550 = vmatpush.bf16.xpose.msra.mxu1 %v499_v37  ;;  %v1726_v39 = vld [vmem:[%s2603_s1 + $0x30] sm:$0xff]  ;;  %v1733_v44 = vld [vmem:[%s2603_s1 + $0x68] sm:$0xff]  ;;  %v469_v45 = vsel %vm428_vm0, %v1725_v43, 0  ;;  %v1724_v48 = vld [vmem:[%s2603_s1 + $0x20] sm:$0xff]  ;;  %s1456_s6 = sshll.u32 %s2405_s17, 8  ;;  %s1306_s13 = scalar_lea.sflag [#allocation3], %s2405_s17 }
  0x1e   : > { %v1734_v40 = vld [vmem:[%s2603_s1 + $0x70] sm:$0xff]  ;;  %v472_v41 = vsel %vm428_vm0, %v1726_v39, 0  ;;  %v493_v46 = vsel %vm428_vm0, %v1733_v44, 0  ;;  %v1732_v49 = vld [vmem:[%s2603_s1 + $0x60] sm:$0xff]  ;;  %v466_v50 = vsel %vm428_vm0, %v1724_v48, 0  ;;  %v1723_v52 = vld [vmem:[%s2603_s1 + $0x18] sm:$0xff] }
  0x1f   : > { %840 = vmatpush.bf16.xpose.msra.mxu2 %v810_v6  ;;  %v496_v42 = vsel %vm428_vm0, %v1734_v40, 0  ;;  %v490_v51 = vsel %vm428_vm0, %v1732_v49, 0  ;;  %v1731_v53 = vld [vmem:[%s2603_s1 + $0x58] sm:$0xff]  ;;  %v463_v54 = vsel %vm428_vm0, %v1723_v52, 0  ;;  %v1740_v56 = vld [vmem:[%s2219_s9 + $0x20] sm:$0xff]  ;;  %v1722_v57 = vld [vmem:[%s2603_s1 + $0x10] sm:$0xff] }
  0x20   : > { %889 = vmatpush.bf16.xpose.msra.mxu3 %v834_v7  ;;  %v487_v55 = vsel %vm428_vm0, %v1731_v53, 0  ;;  %v1730_v58 = vld [vmem:[%s2603_s1 + $0x50] sm:$0xff]  ;;  %v460_v59 = vsel %vm428_vm0, %v1722_v57, 0  ;;  %v1721_v61 = vld [vmem:[%s2603_s1 + $0x8] sm:$0xff]  ;;  %v1720_v2 = vld [vmem:[%s2603_s1] sm:$0xff]  ;;  %s2458_s26 = scalar_lea.vmem [#allocation4], %s1456_s6 }
  0x21   : > { %v484_v60 = vsel %vm428_vm0, %v1730_v58, 0  ;;  %v1729_v62 = vld [vmem:[%s2603_s1 + $0x48] sm:$0xff]  ;;  %v457_v63 = vsel %vm428_vm0, %v1721_v61, 0  ;;  %v1728_v3 = vld [vmem:[%s2603_s1 + $0x40] sm:$0xff]  ;;  %v454_v4 = vsel %vm428_vm0, %v1720_v2, 0  ;;  %v1742_v7 = vld [vmem:[%s2219_s9 + $0x30] sm:$0xff] }
  0x22   : > { %v481_v0 = vsel %vm428_vm0, %v1729_v62, 0  ;;  %v1741_v1 = vld [vmem:[%s2219_s9 + $0x28] sm:$0xff]  ;;  %v478_v5 = vsel %vm428_vm0, %v1728_v3, 0  ;;  %v1712_v6 = vld [vmem:[%s2308_s25] sm:$0xff]  ;;  %v1743_v9 = vld [vmem:[%s2219_s9 + $0x38] sm:$0xff]  ;;  %s2418_s9 = scalar_lea.vmem [#allocation2], %s1456_s6 }
  0x23   : > { %v1713_v8 = vld [vmem:[%s2308_s25 + $0x8] sm:$0xff]  ;;  %s1324_s11 = sshll.u32 %s2418_s9, 4  ;;  %s1325_s11 = int_to_ptr.vmem [resolvable:$true] %s1324_s11 }
  0x24   : > { %502 = vmatpush.bf16.xpose.msra.mxu0 %v472_v41 }
  0x25   : > { %551 = vmatpush.bf16.xpose.msra.mxu1 %v496_v42 }
  0x27   : > { %841 = vmatpush.bf16.xpose.msra.mxu2 %v807_v10  ;;  %v1714_v10 = vld [vmem:[%s2308_s25 + $0x10] sm:$0xff] }
  0x28   : > { %890 = vmatpush.bf16.xpose.msra.mxu3 %v831_v11 }
  0x2c   : > { %503 = vmatpush.bf16.xpose.msra.mxu0 %v469_v45  ;;  %v1717_v45 = vld [vmem:[%s2308_s25 + $0x28] sm:$0xff] }
  0x2d   : > { %552 = vmatpush.bf16.xpose.msra.mxu1 %v493_v46 }
  0x2f   : > { %842 = vmatpush.bf16.xpose.msra.mxu2 %v804_v14 }
  0x30   : > { %891 = vmatpush.bf16.xpose.msra.mxu3 %v828_v15  ;;  %v1715_v15 = vld [vmem:[%s2308_s25 + $0x18] sm:$0xff] }
  0x34   : > { %504 = vmatpush.bf16.xpose.msra.mxu0 %v466_v50 }
  0x35   : > { %553 = vmatpush.bf16.xpose.msra.mxu1 %v490_v51 }
  0x37   : > { %843 = vmatpush.bf16.xpose.msra.mxu2 %v801_v18 }
  0x38   : > { %892 = vmatpush.bf16.xpose.msra.mxu3 %v825_v19 }
  0x3c   : > { %505 = vmatpush.bf16.xpose.msra.mxu0 %v463_v54 }
  0x3d   : > { %554 = vmatpush.bf16.xpose.msra.mxu1 %v487_v55 }
  0x3f   : > { %844 = vmatpush.bf16.xpose.msra.mxu2 %v798_v22 }
  0x40   : > { %893 = vmatpush.bf16.xpose.msra.mxu3 %v822_v23 }
  0x44   : > { %506 = vmatpush.bf16.xpose.msra.mxu0 %v460_v59 }
  0x45   : > { %555 = vmatpush.bf16.xpose.msra.mxu1 %v484_v60  ;;  %v1718_v60 = vld [vmem:[%s2308_s25 + $0x30] sm:$0xff] }
  0x47   : > { %845 = vmatpush.bf16.xpose.msra.mxu2 %v795_v26 }
  0x48   : > { %894 = vmatpush.bf16.xpose.msra.mxu3 %v819_v27 }
  0x4c   : > { %507 = vmatpush.bf16.xpose.msra.mxu0 %v457_v63 }
  0x4d   : > { %556 = vmatpush.bf16.xpose.msra.mxu1 %v481_v0 }
  0x4f   : > { %846 = vmatpush.bf16.xpose.msra.mxu2 %v792_v30  ;;  %v1716_v30 = vld [vmem:[%s2308_s25 + $0x20] sm:$0xff] }
  0x50   : > { %895 = vmatpush.bf16.xpose.msra.mxu3 %v816_v31 }
  0x54   : > { %508 = vmatpush.bf16.xpose.msra.mxu0 %v454_v4 }
  0x55   : > { %557 = vmatpush.bf16.xpose.msra.mxu1 %v478_v5 }
  0x56   : > { %1670 = vmatmul.msk.bf16.vlgmr.msra.gmra.mxu2 %vm428_vm0, %v1736_v32 }
  0x57   : > { %1678 = vmatmul.msk.bf16.vlgmr.msra.gmra.mxu3 %vm428_vm0, %v1736_v32 }
  0x5b   : > { %1558 = vmatmul.msk.bf16.vlgmr.msra.gmra.mxu0 %vm428_vm0, %v1712_v6 }
  0x5c   : > { %1566 = vmatmul.msk.bf16.vlgmr.msra.gmra.mxu1 %vm428_vm0, %v1712_v6 }
  0x66   : > { %1671 = vmatmul.msk.bf16.gmra.mxu2 %vm428_vm0, %v1737_v33 }
  0x67   : > { %1679 = vmatmul.msk.bf16.gmra.mxu3 %vm428_vm0, %v1737_v33 }
  0x6b   : > { %1559 = vmatmul.msk.bf16.gmra.mxu0 %vm428_vm0, %v1713_v8 }
  0x6c   : > { %1567 = vmatmul.msk.bf16.gmra.mxu1 %vm428_vm0, %v1713_v8 }
  0x76   : > { %1672 = vmatmul.msk.bf16.gmra.mxu2 %vm428_vm0, %v1738_v38 }
  0x77   : > { %1680 = vmatmul.msk.bf16.gmra.mxu3 %vm428_vm0, %v1738_v38 }
  0x7b   : > { %1560 = vmatmul.msk.bf16.gmra.mxu0 %vm428_vm0, %v1714_v10 }
  0x7c   : > { %1568 = vmatmul.msk.bf16.gmra.mxu1 %vm428_vm0, %v1714_v10 }
  0x86   : > { %1673 = vmatmul.msk.bf16.gmra.mxu2 %vm428_vm0, %v1739_v47 }
  0x87   : > { %1681 = vmatmul.msk.bf16.gmra.mxu3 %vm428_vm0, %v1739_v47 }
  0x8b   : > { %1561 = vmatmul.msk.bf16.gmra.mxu0 %vm428_vm0, %v1715_v15 }
  0x8c   : > { %1569 = vmatmul.msk.bf16.gmra.mxu1 %vm428_vm0, %v1715_v15 }
  0x96   : > { %1674 = vmatmul.msk.bf16.gmra.mxu2 %vm428_vm0, %v1740_v56 }
  0x97   : > { %1682 = vmatmul.msk.bf16.gmra.mxu3 %vm428_vm0, %v1740_v56 }
  0x9b   : > { %1562 = vmatmul.msk.bf16.gmra.mxu0 %vm428_vm0, %v1716_v30 }
  0x9c   : > { %1570 = vmatmul.msk.bf16.gmra.mxu1 %vm428_vm0, %v1716_v30 }
  0xa6   : > { %1675 = vmatmul.msk.bf16.gmra.mxu2 %vm428_vm0, %v1741_v1 }
  0xa7   : > { %1683 = vmatmul.msk.bf16.gmra.mxu3 %vm428_vm0, %v1741_v1 }
  0xab   : > { %1563 = vmatmul.msk.bf16.gmra.mxu0 %vm428_vm0, %v1717_v45 }
  0xac   : > { %1571 = vmatmul.msk.bf16.gmra.mxu1 %vm428_vm0, %v1717_v45 }
  0xb6   : > { %1676 = vmatmul.msk.bf16.gmra.mxu2 %vm428_vm0, %v1742_v7 }
  0xb7   : > { %1684 = vmatmul.msk.bf16.gmra.mxu3 %vm428_vm0, %v1742_v7 }
  0xbb   : > { %1564 = vmatmul.msk.bf16.gmra.mxu0 %vm428_vm0, %v1718_v60 }
  0xbc   : > { %1572 = vmatmul.msk.bf16.gmra.mxu1 %vm428_vm0, %v1718_v60 }
  0xc6   : > { %1677 = vmatmul.msk.bf16.gmra.mxu2 %vm428_vm0, %v1743_v9 }
  0xc7   : > { %1685 = vmatmul.msk.bf16.gmra.mxu3 %vm428_vm0, %v1743_v9 }
  0xd8   : > { %v510_v30 = vpop.f32.mrf.mxu0 }
  0xd9   : > { %v848_v11 = vpop.f32.mrf.mxu2 }
  0xda   : > { %v897_v12 = vpop.f32.mrf.mxu3  ;;  %v1097_v13 = vmul.f32 1.442695, %v848_v11  ;;  %v1719_v11 = vld [vmem:[%s2308_s25 + $0x38] sm:$0xff]  ;;  %s1990_s25 = scalar_lea.hbm %s2606_s4, 512 }
  0xdb   : > { %v1099_v14 = vmul.f32 1.442695, %v897_v12  ;;  %1565 = vmatmul.msk.bf16.gmra.mxu0 %vm428_vm0, %v1719_v11  ;;  %1573 = vmatmul.msk.bf16.gmra.mxu1 %vm428_vm0, %v1719_v11  ;;  %p1992_p1 = scmp.lt.s32.totalorder %s1990_s25, %s1986_s15 }
  0xdc   : > { %1810 = vpow2.f32 %v1097_v13 }
  0xdd   : > { %1812 = vpow2.f32 %v1099_v14  ;;  %p1993_p2 = por %p1992_p1, %p1991_p0 }
  0xdf   : > { %p1994_p3 = pnand %p1993_p2, %p1989_p13 }
  0xe0   : > { %v512_v45 = vpop.f32.mrf.mxu0 }
  0xe1   : > { %v850_v16 = vpop.f32.mrf.mxu2 }
  0xe2   : > { %v899_v17 = vpop.f32.mrf.mxu3  ;;  %v2328_v18 = vpop.eup %1810  ;;  %v1101_v19 = vmul.f32 1.442695, %v850_v16 }
  0xe3   : > { %v1103_v20 = vmul.f32 1.442695, %v899_v17  ;;  %v2330_v21 = vpop.eup %1812 }
  0xe4   : > { %1814 = vpow2.f32 %v1101_v19  ;;  %v1161_v22 = vadd.f32 %v2330_v21, %v2328_v18 }
  0xe5   : > { %1816 = vpow2.f32 %v1103_v20 }
  0xe6   : > { %1162 = vadd.xlane.f32.xlu0 %v1161_v22 }
  0xe9   : > { %v853_v23 = vpop.f32.mrf.mxu2 }
  0xea   : > { %v902_v24 = vpop.f32.mrf.mxu3  ;;  %v2334_v25 = vpop.eup %1814  ;;  %v1105_v26 = vmul.f32 1.442695, %v853_v23 }
  0xeb   : > { %v1107_v27 = vmul.f32 1.442695, %v902_v24  ;;  %v2336_v28 = vpop.eup %1816 }
  0xec   : > { %1818 = vpow2.f32 %v1105_v26  ;;  %v1164_v29 = vadd.f32 %v2336_v28, %v2334_v25 }
  0xed   : > { %1820 = vpow2.f32 %v1107_v27 }
  0xee   : > { %1165 = vadd.xlane.f32.xlu0 %v1164_v29 }
  0xf1   : > { %v855_v31 = vpop.f32.mrf.mxu2 }
  0xf2   : > { %v904_v32 = vpop.f32.mrf.mxu3  ;;  %v2343_v33 = vpop.eup %1818  ;;  %v1109_v34 = vmul.f32 1.442695, %v855_v31 }
  0xf3   : > { %v1111_v35 = vmul.f32 1.442695, %v904_v32  ;;  %v2345_v36 = vpop.eup %1820  ;;  %v559_v31 = vpop.f32.mrf.mxu1  ;;  %v937_v32 = vmul.f32 0.5, %v510_v30 }
  0xf4   : > { %1822 = vpow2.f32 %v1109_v34  ;;  %v1167_v37 = vadd.f32 %v2345_v36, %v2343_v33  ;;  %v938_v34 = vmul.f32 0.5, %v559_v31 }
  0xf5   : > { %1824 = vpow2.f32 %v1111_v35 }
  0xf6   : > { %1168 = vadd.xlane.f32.xlu1 %v1167_v37 }
  0xf9   : > { %v858_v38 = vpop.f32.mrf.mxu2 }
  0xfa   : > { %v907_v39 = vpop.f32.mrf.mxu3  ;;  %v2349_v40 = vpop.eup %1822  ;;  %v1113_v41 = vmul.f32 1.442695, %v858_v38 }
  0xfb   : > { %v1115_v42 = vmul.f32 1.442695, %v907_v39  ;;  %v2351_v43 = vpop.eup %1824 }
  0xfc   : > { %1826 = vpow2.f32 %v1113_v41  ;;  %v1170_v44 = vadd.f32 %v2351_v43, %v2349_v40 }
  0xfd   : > { %1828 = vpow2.f32 %v1115_v42 }
  0xfe   : > { %1171 = vadd.xlane.f32.xlu1 %v1170_v44 }
 0x101   : > { %v860_v46 = vpop.f32.mrf.mxu2 }
 0x102   : > { %v909_v47 = vpop.f32.mrf.mxu3  ;;  %v2358_v48 = vpop.eup %1826  ;;  %v1117_v49 = vmul.f32 1.442695, %v860_v46 }
 0x103   : > { %v1119_v50 = vmul.f32 1.442695, %v909_v47  ;;  %v2360_v51 = vpop.eup %1828  ;;  %v561_v46 = vpop.f32.mrf.mxu1 }
 0x104   : > { %1830 = vpow2.f32 %v1117_v49  ;;  %v1173_v52 = vadd.f32 %v2360_v51, %v2358_v48  ;;  %v939_v49 = vmul.f32 0.5, %v512_v45 }
 0x105   : > { %1832 = vpow2.f32 %v1119_v50  ;;  %v940_v50 = vmul.f32 0.5, %v561_v46 }
 0x106   : > { %1174 = vadd.xlane.f32.xlu2 %v1173_v52 }
 0x109   : > { %v863_v53 = vpop.f32.mrf.mxu2 }
 0x10a   : > { %v912_v54 = vpop.f32.mrf.mxu3  ;;  %v2364_v55 = vpop.eup %1830  ;;  %v1121_v56 = vmul.f32 1.442695, %v863_v53 }
 0x10b   : > { %v1123_v57 = vmul.f32 1.442695, %v912_v54  ;;  %v2366_v58 = vpop.eup %1832 }
 0x10c   : > { %1834 = vpow2.f32 %v1121_v56  ;;  %v1176_v59 = vadd.f32 %v2366_v58, %v2364_v55 }
 0x10d   : > { %1836 = vpow2.f32 %v1123_v57 }
 0x10e   : > { %1177 = vadd.xlane.f32.xlu2 %v1176_v59 }
 0x111   : > { %v865_v61 = vpop.f32.mrf.mxu2 }
 0x112   : > { %v914_v62 = vpop.f32.mrf.mxu3  ;;  %v2373_v63 = vpop.eup %1834  ;;  %v1125_v0 = vmul.f32 1.442695, %v865_v61 }
 0x113   : > { %v1127_v1 = vmul.f32 1.442695, %v914_v62  ;;  %v2375_v2 = vpop.eup %1836 }
 0x114   : > { %1838 = vpow2.f32 %v1125_v0  ;;  %v1179_v3 = vadd.f32 %v2375_v2, %v2373_v63 }
 0x115   : > { %1840 = vpow2.f32 %v1127_v1 }
 0x116   : > { %1180 = vadd.xlane.f32.xlu0 %v1179_v3 }
 0x119   : > { %v868_v4 = vpop.f32.mrf.mxu2 }
 0x11a   : > { %v917_v5 = vpop.f32.mrf.mxu3  ;;  %v2379_v6 = vpop.eup %1838  ;;  %v1129_v7 = vmul.f32 1.442695, %v868_v4 }
 0x11b   : > { %v1131_v8 = vmul.f32 1.442695, %v917_v5  ;;  %v2381_v9 = vpop.eup %1840 }
 0x11c   : > { %1842 = vpow2.f32 %v1129_v7  ;;  %v1182_v10 = vadd.f32 %v2381_v9, %v2379_v6 }
 0x11d   : > { %1844 = vpow2.f32 %v1131_v8  ;;  %v515_v8 = vpop.f32.mrf.mxu0 }
 0x11e   : > { %1183 = vadd.xlane.f32.xlu1 %v1182_v10  ;;  %v564_v10 = vpop.f32.mrf.mxu1 }
 0x11f   : > { %v942_v30 = vmul.f32 0.5, %v564_v10 }
 0x121   : > { %v870_v12 = vpop.f32.mrf.mxu2 }
 0x122   : > { %v919_v13 = vpop.f32.mrf.mxu3  ;;  %v2388_v14 = vpop.eup %1842  ;;  %v1133_v15 = vmul.f32 1.442695, %v870_v12 }
 0x123   : > { %v1135_v16 = vmul.f32 1.442695, %v919_v13  ;;  %v2390_v17 = vpop.eup %1844 }
 0x124   : > { %1846 = vpow2.f32 %v1133_v15  ;;  %v1185_v19 = vadd.f32 %v2390_v17, %v2388_v14 }
 0x125   : > { %1848 = vpow2.f32 %v1135_v16  ;;  %v517_v31 = vpop.f32.mrf.mxu0 }
 0x126   : > { %1186 = vadd.xlane.f32.xlu2 %v1185_v19 }
 0x129   : > { %v873_v20 = vpop.f32.mrf.mxu2 }
 0x12a   : > { %v922_v22 = vpop.f32.mrf.mxu3  ;;  %v2394_v23 = vpop.eup %1846  ;;  %v1137_v24 = vmul.f32 1.442695, %v873_v20 }
 0x12b   : > { %v1139_v26 = vmul.f32 1.442695, %v922_v22  ;;  %v2396_v27 = vpop.eup %1848 }
 0x12c   : > { %1850 = vpow2.f32 %v1137_v24  ;;  %v1188_v29 = vadd.f32 %v2396_v27, %v2394_v23 }
 0x12d   : > { %1852 = vpow2.f32 %v1139_v26 }
 0x12e   : > { %1189 = vadd.xlane.f32.xlu0 %v1188_v29  ;;  %1854 = vtanh.f32 %v937_v32  ;;  %v941_v29 = vmul.f32 0.5, %v515_v8  ;;  %v566_v32 = vpop.f32.mrf.mxu1 }
 0x12f   : > { %1856 = vtanh.f32 %v938_v34  ;;  %v944_v45 = vmul.f32 0.5, %v566_v32 }
 0x131   : > { %v875_v35 = vpop.f32.mrf.mxu2 }
 0x132   : > { %v924_v37 = vpop.f32.mrf.mxu3  ;;  %v2400_v38 = vpop.eup %1850  ;;  %v1141_v39 = vmul.f32 1.442695, %v875_v35 }
 0x133   : > { %v1143_v41 = vmul.f32 1.442695, %v924_v37  ;;  %v2402_v42 = vpop.eup %1852  ;;  %v943_v37 = vmul.f32 0.5, %v517_v31 }
 0x134   : > { %1858 = vpow2.f32 %v1141_v39  ;;  %v1191_v44 = vadd.f32 %v2402_v42, %v2400_v38  ;;  %v1855_v47 = vpop.eup %1854 }
 0x135   : > { %1860 = vpow2.f32 %v1143_v41  ;;  %v1857_v52 = vpop.eup %1856  ;;  %v1001_v53 = vadd.f32 1.0, %v1855_v47 }
 0x136   : > { %1192 = vadd.xlane.f32.xlu1 %v1191_v44  ;;  %v1002_v57 = vadd.f32 1.0, %v1857_v52  ;;  %1862 = vtanh.f32 %v939_v49 }
 0x137   : > { %v1033_v62 = vmul.f32 0.5, %v1001_v53  ;;  %1864 = vtanh.f32 %v940_v50 }
 0x138   : > { %v1034_v1 = vmul.f32 0.5, %v1002_v57 }
 0x139   : > { %v878_v54 = vpop.f32.mrf.mxu2  ;;  %1065 = vst [vmem:[%s2418_s9] sm:$0xff] %v1033_v62 }
 0x13a   : > { %v927_v56 = vpop.f32.mrf.mxu3  ;;  %v2410_v59 = vpop.eup %1858  ;;  %v1145_v60 = vmul.f32 1.442695, %v878_v54  ;;  %1066 = vst [vmem:[%s2418_s9 + $0x8] sm:$0xff] %v1034_v1 }
 0x13b   : > { %v1147_v61 = vmul.f32 1.442695, %v927_v56  ;;  %v2412_v0 = vpop.eup %1860  ;;  %v520_v54 = vpop.f32.mrf.mxu0 }
 0x13c   : > { %1866 = vpow2.f32 %v1145_v60  ;;  %v1194_v3 = vadd.f32 %v2412_v0, %v2410_v59  ;;  %v1863_v4 = vpop.eup %1862  ;;  %v569_v56 = vpop.f32.mrf.mxu1 }
 0x13d   : > { %1868 = vpow2.f32 %v1147_v61  ;;  %v1865_v5 = vpop.eup %1864  ;;  %v1003_v7 = vadd.f32 1.0, %v1863_v4 }
 0x13e   : > { %1195 = vadd.xlane.f32.xlu2 %v1194_v3  ;;  %v1004_v13 = vadd.f32 1.0, %v1865_v5 }
 0x13f   : > { %v1035_v20 = vmul.f32 0.5, %v1003_v7 }
 0x140   : > { %v1036_v24 = vmul.f32 0.5, %v1004_v13 }
 0x141   : > { %v880_v11 = vpop.f32.mrf.mxu2  ;;  %1067 = vst [vmem:[%s2418_s9 + $0x10] sm:$0xff] %v1035_v20 }
 0x142   : > { %v929_v12 = vpop.f32.mrf.mxu3  ;;  %v2422_v15 = vpop.eup %1866  ;;  %v1149_v16 = vmul.f32 1.442695, %v880_v11  ;;  %1068 = vst [vmem:[%s2418_s9 + $0x18] sm:$0xff] %v1036_v24 }
 0x143   : > { %v1151_v19 = vmul.f32 1.442695, %v929_v12  ;;  %v2424_v22 = vpop.eup %1868  ;;  %v522_v24 = vpop.f32.mrf.mxu0 }
 0x144   : > { %1870 = vpow2.f32 %v1149_v16  ;;  %v1197_v26 = vadd.f32 %v2424_v22, %v2422_v15  ;;  %v945_v16 = vmul.f32 0.5, %v520_v54 }
 0x145   : > { %1872 = vpow2.f32 %v1151_v19  ;;  %v946_v19 = vmul.f32 0.5, %v569_v56 }
 0x146   : > { %1198 = vadd.xlane.f32.xlu0 %v1197_v26  ;;  %1874 = vtanh.f32 %v941_v29  ;;  %v571_v26 = vpop.f32.mrf.mxu1 }
 0x147   : > { %1876 = vtanh.f32 %v942_v30  ;;  %v947_v30 = vmul.f32 0.5, %v522_v24  ;;  %v948_v31 = vmul.f32 0.5, %v571_v26 }
 0x148   : > { %1878 = vtanh.f32 %v943_v37 }
 0x149   : > { %v883_v34 = vpop.f32.mrf.mxu2 }
 0x14a   : > { %v932_v35 = vpop.f32.mrf.mxu3  ;;  %v2430_v39 = vpop.eup %1870  ;;  %v1153_v41 = vmul.f32 1.442695, %v883_v34 }
 0x14b   : > { %v1155_v44 = vmul.f32 1.442695, %v932_v35  ;;  %v2432_v46 = vpop.eup %1872 }
 0x14c   : > { %1880 = vpow2.f32 %v1153_v41  ;;  %v1200_v47 = vadd.f32 %v2432_v46, %v2430_v39  ;;  %v1875_v49 = vpop.eup %1874 }
 0x14d   : > { %1882 = vpow2.f32 %v1155_v44  ;;  %v1877_v50 = vpop.eup %1876  ;;  %v1005_v52 = vadd.f32 1.0, %v1875_v49  ;;  %v525_v49 = vpop.f32.mrf.mxu0 }
 0x14e   : > { %1201 = vadd.xlane.f32.xlu1 %v1200_v47  ;;  %1884 = vtanh.f32 %v944_v45  ;;  %v1006_v53 = vadd.f32 1.0, %v1877_v50  ;;  %v1879_v57 = vpop.eup %1878  ;;  %v574_v50 = vpop.f32.mrf.mxu1 }
 0x14f   : > { %v1037_v62 = vmul.f32 0.5, %v1005_v52  ;;  %v1007_v7 = vadd.f32 1.0, %v1879_v57 }
 0x150   : > { %v1038_v5 = vmul.f32 0.5, %v1006_v53 }
 0x151   : > { %v885_v60 = vpop.f32.mrf.mxu2  ;;  %1069 = vst [vmem:[%s2418_s9 + $0x20] sm:$0xff] %v1037_v62  ;;  %v1039_v12 = vmul.f32 0.5, %v1007_v7 }
 0x152   : > { %v934_v61 = vpop.f32.mrf.mxu3  ;;  %v2436_v1 = vpop.eup %1880  ;;  %v1157_v3 = vmul.f32 1.442695, %v885_v60  ;;  %1070 = vst [vmem:[%s2418_s9 + $0x28] sm:$0xff] %v1038_v5 }
 0x153   : > { %v1159_v4 = vmul.f32 1.442695, %v934_v61  ;;  %v2438_v8 = vpop.eup %1882  ;;  %1071 = vst [vmem:[%s2418_s9 + $0x30] sm:$0xff] %v1039_v12  ;;  %v950_v12 = vmul.f32 0.5, %v574_v50 }
 0x154   : > { %v1885_v10 = vpop.eup %1884  ;;  %1886 = vpow2.f32 %v1157_v3  ;;  %v1203_v11 = vadd.f32 %v2438_v8, %v2436_v1 }
 0x155   : > { %1888 = vpow2.f32 %v1159_v4  ;;  %v1008_v13 = vadd.f32 1.0, %v1885_v10 }
 0x156   : > { %1204 = vadd.xlane.f32.xlu2 %v1203_v11  ;;  %1890 = vtanh.f32 %v945_v16  ;;  %v949_v11 = vmul.f32 0.5, %v525_v49 }
 0x157   : > { %v1040_v20 = vmul.f32 0.5, %v1008_v13  ;;  %1892 = vtanh.f32 %v946_v19 }
 0x158   : > { %1894 = vtanh.f32 %v947_v30 }
 0x159   : > { %v1163_v29 = vpop.xlane.xlu0 %1162  ;;  %1072 = vst [vmem:[%s2418_s9 + $0x38] sm:$0xff] %v1040_v20 }
 0x15a   : > { %v2446_v32 = vpop.eup %1886  ;;  %v1686_v34 = vadd.f32 -56.0, %v1163_v29 }
 0x15b   : > { %v2448_v35 = vpop.eup %1888 }
 0x15c   : > { %1896 = vrcp.f32 %v1686_v34  ;;  %v1206_v37 = vadd.f32 %v2448_v35, %v2446_v32  ;;  %v1891_v41 = vpop.eup %1890 }
 0x15d   : > { %1898 = vtanh.f32 %v948_v31  ;;  %v1893_v44 = vpop.eup %1892  ;;  %v1009_v45 = vadd.f32 1.0, %v1891_v41 }
 0x15e   : > { %1207 = vadd.xlane.f32.xlu0 %v1206_v37  ;;  %v1010_v47 = vadd.f32 1.0, %v1893_v44  ;;  %v1895_v52 = vpop.eup %1894 }
 0x15f   : > { %v1041_v54 = vmul.f32 0.5, %v1009_v45  ;;  %v1011_v61 = vadd.f32 1.0, %v1895_v52 }
 0x160   : > { %v1042_v60 = vmul.f32 0.5, %v1010_v47 }
 0x161   : > { %v1166_v53 = vpop.xlane.xlu0 %1165  ;;  %1073 = vst [vmem:[%s2418_s9 + $0x40] sm:$0xff] %v1041_v54  ;;  %v1043_v5 = vmul.f32 0.5, %v1011_v61 }
 0x162   : > { %v1897_v56 = vpop.eup %1896  ;;  %v1687_v57 = vadd.f32 -56.0, %v1166_v53  ;;  %1074 = vst [vmem:[%s2418_s9 + $0x48] sm:$0xff] %v1042_v60 }
 0x163   : > { %v1899_v62 = vpop.eup %1898  ;;  %v1241_v3 = vmul.f32 %v1897_v56, %v2328_v18  ;;  %v1242_v4 = vmul.f32 %v1897_v56, %v2330_v21  ;;  %1075 = vst [vmem:[%s2418_s9 + $0x50] sm:$0xff] %v1043_v5  ;;  %v527_v18 = vpop.f32.mrf.mxu0 }
 0x164   : > { %1900 = vrcp.f32 %v1687_v57  ;;  %v1012_v7 = vadd.f32 1.0, %v1899_v62  ;;  %v576_v21 = vpop.f32.mrf.mxu1  ;;  %v951_v16 = vmul.f32 0.5, %v527_v18 }
 0x165   : > { %1273 = vst [vmem:[%s2458_s26] sm:$0xff] %v1241_v3  ;;  %1902 = vtanh.f32 %v949_v11  ;;  %v952_v19 = vmul.f32 0.5, %v576_v21 }
 0x166   : > { %1274 = vst [vmem:[%s2458_s26 + $0x8] sm:$0xff] %v1242_v4  ;;  %v1044_v10 = vmul.f32 0.5, %v1012_v7  ;;  %1904 = vtanh.f32 %v950_v12 }
 0x167   : > { %1906 = vtanh.f32 %v951_v16 }
 0x168   : > { %1076 = vst [vmem:[%s2418_s9 + $0x58] sm:$0xff] %v1044_v10 }
 0x169   : > { %v1169_v13 = vpop.xlane.xlu1 %1168 }
 0x16a   : > { %v1901_v20 = vpop.eup %1900  ;;  %v1688_v24 = vadd.f32 -56.0, %v1169_v13 }
 0x16b   : > { %v1243_v26 = vmul.f32 %v1901_v20, %v2334_v25  ;;  %v1244_v29 = vmul.f32 %v1901_v20, %v2336_v28  ;;  %v1903_v30 = vpop.eup %1902  ;;  %v530_v41 = vpop.f32.mrf.mxu0 }
 0x16c   : > { %1908 = vrcp.f32 %v1688_v24  ;;  %v1905_v31 = vpop.eup %1904  ;;  %v1013_v34 = vadd.f32 1.0, %v1903_v30  ;;  %v579_v44 = vpop.f32.mrf.mxu1  ;;  %v953_v62 = vmul.f32 0.5, %v530_v41 }
 0x16d   : > { %1275 = vst [vmem:[%s2458_s26 + $0x10] sm:$0xff] %v1243_v26  ;;  %1910 = vtanh.f32 %v952_v19  ;;  %v1014_v37 = vadd.f32 1.0, %v1905_v31  ;;  %v1907_v45 = vpop.eup %1906  ;;  %v954_v3 = vmul.f32 0.5, %v579_v44 }
 0x16e   : > { %1276 = vst [vmem:[%s2458_s26 + $0x18] sm:$0xff] %v1244_v29  ;;  %v1045_v25 = vmul.f32 0.5, %v1013_v34  ;;  %v1015_v52 = vadd.f32 1.0, %v1907_v45 }
 0x16f   : > { %v1046_v50 = vmul.f32 0.5, %v1014_v37 }
 0x170   : > { %1077 = vst [vmem:[%s2418_s9 + $0x60] sm:$0xff] %v1045_v25  ;;  %v1047_v57 = vmul.f32 0.5, %v1015_v52 }
 0x171   : > { %v1172_v47 = vpop.xlane.xlu1 %1171  ;;  %1078 = vst [vmem:[%s2418_s9 + $0x68] sm:$0xff] %v1046_v50 }
 0x172   : > { %v1909_v49 = vpop.eup %1908  ;;  %v1689_v28 = vadd.f32 -56.0, %v1172_v47  ;;  %1079 = vst [vmem:[%s2418_s9 + $0x70] sm:$0xff] %v1047_v57 }
 0x173   : > { %v1911_v53 = vpop.eup %1910  ;;  %v1245_v54 = vmul.f32 %v1909_v49, %v2343_v33  ;;  %v1246_v56 = vmul.f32 %v1909_v49, %v2345_v36  ;;  %v532_v4 = vpop.f32.mrf.mxu0 }
 0x174   : > { %1912 = vrcp.f32 %v1689_v28  ;;  %v1016_v60 = vadd.f32 1.0, %v1911_v53  ;;  %v581_v5 = vpop.f32.mrf.mxu1  ;;  %v955_v36 = vmul.f32 0.5, %v532_v4 }
 0x175   : > { %1277 = vst [vmem:[%s2458_s26 + $0x20] sm:$0xff] %v1245_v54  ;;  %1914 = vtanh.f32 %v953_v62  ;;  %v956_v7 = vmul.f32 0.5, %v581_v5 }
 0x176   : > { %1278 = vst [vmem:[%s2458_s26 + $0x28] sm:$0xff] %v1246_v56  ;;  %v1048_v61 = vmul.f32 0.5, %v1016_v60  ;;  %1916 = vtanh.f32 %v954_v3 }
 0x177   : > { %1918 = vtanh.f32 %v955_v36 }
 0x178   : > { %1080 = vst [vmem:[%s2418_s9 + $0x78] sm:$0xff] %v1048_v61 }
 0x179   : > { %v1175_v33 = vpop.xlane.xlu2 %1174 }
 0x17a   : > { %v1913_v10 = vpop.eup %1912  ;;  %v1690_v11 = vadd.f32 -56.0, %v1175_v33 }
 0x17b   : > { %v1247_v12 = vmul.f32 %v1913_v10, %v2349_v40  ;;  %v1248_v18 = vmul.f32 %v1913_v10, %v2351_v43  ;;  %v1915_v21 = vpop.eup %1914  ;;  %v535_v20 = vpop.f32.mrf.mxu0 }
 0x17c   : > { %1920 = vrcp.f32 %v1690_v11  ;;  %v1917_v13 = vpop.eup %1916  ;;  %v1017_v16 = vadd.f32 1.0, %v1915_v21  ;;  %v584_v24 = vpop.f32.mrf.mxu1  ;;  %v957_v49 = vmul.f32 0.5, %v535_v20 }
 0x17d   : > { %1279 = vst [vmem:[%s2458_s26 + $0x30] sm:$0xff] %v1247_v12  ;;  %1922 = vtanh.f32 %v956_v7  ;;  %v1018_v19 = vadd.f32 1.0, %v1917_v13  ;;  %v1919_v26 = vpop.eup %1918  ;;  %v958_v28 = vmul.f32 0.5, %v584_v24 }
 0x17e   : > { %1280 = vst [vmem:[%s2458_s26 + $0x38] sm:$0xff] %v1248_v18  ;;  %v1049_v40 = vmul.f32 0.5, %v1017_v16  ;;  %v1019_v34 = vadd.f32 1.0, %v1919_v26 }
 0x17f   : > { %v1050_v31 = vmul.f32 0.5, %v1018_v19 }
 0x180   : > { %1081 = vst [vmem:[%s2418_s9 + $0x80] sm:$0xff] %v1049_v40  ;;  %v1051_v45 = vmul.f32 0.5, %v1019_v34 }
 0x181   : > { %v1178_v29 = vpop.xlane.xlu2 %1177  ;;  %1082 = vst [vmem:[%s2418_s9 + $0x88] sm:$0xff] %v1050_v31 }
 0x182   : > { %v1921_v30 = vpop.eup %1920  ;;  %v1691_v43 = vadd.f32 -56.0, %v1178_v29  ;;  %1083 = vst [vmem:[%s2418_s9 + $0x90] sm:$0xff] %v1051_v45 }
 0x183   : > { %v1923_v37 = vpop.eup %1922  ;;  %v1249_v41 = vmul.f32 %v1921_v30, %v2358_v48  ;;  %v1250_v44 = vmul.f32 %v1921_v30, %v2360_v51  ;;  %v537_v50 = vpop.f32.mrf.mxu0 }
 0x184   : > { %1924 = vrcp.f32 %v1691_v43  ;;  %v1020_v47 = vadd.f32 1.0, %v1923_v37  ;;  %v586_v52 = vpop.f32.mrf.mxu1  ;;  %v959_v51 = vmul.f32 0.5, %v537_v50 }
 0x185   : > { %1281 = vst [vmem:[%s2458_s26 + $0x40] sm:$0xff] %v1249_v41  ;;  %1926 = vtanh.f32 %v957_v49  ;;  %v960_v53 = vmul.f32 0.5, %v586_v52 }
 0x186   : > { %1282 = vst [vmem:[%s2458_s26 + $0x48] sm:$0xff] %v1250_v44  ;;  %v1052_v25 = vmul.f32 0.5, %v1020_v47  ;;  %1928 = vtanh.f32 %v958_v28 }
 0x187   : > { %1930 = vtanh.f32 %v959_v51 }
 0x188   : > { %1084 = vst [vmem:[%s2418_s9 + $0x98] sm:$0xff] %v1052_v25 }
 0x189   : > { %v1181_v48 = vpop.xlane.xlu0 %1180 }
 0x18a   : > { %v1925_v54 = vpop.eup %1924  ;;  %v1692_v56 = vadd.f32 -56.0, %v1181_v48 }
 0x18b   : > { %v1251_v57 = vmul.f32 %v1925_v54, %v2364_v55  ;;  %v1252_v60 = vmul.f32 %v1925_v54, %v2366_v58  ;;  %v1927_v61 = vpop.eup %1926  ;;  %v540_v5 = vpop.f32.mrf.mxu0 }
 0x18c   : > { %1932 = vrcp.f32 %v1692_v56  ;;  %v1929_v62 = vpop.eup %1928  ;;  %v1021_v3 = vadd.f32 1.0, %v1927_v61  ;;  %v589_v33 = vpop.f32.mrf.mxu1  ;;  %v961_v24 = vmul.f32 0.5, %v540_v5 }
 0x18d   : > { %1283 = vst [vmem:[%s2458_s26 + $0x50] sm:$0xff] %v1251_v57  ;;  %1934 = vtanh.f32 %v960_v53  ;;  %v1022_v4 = vadd.f32 1.0, %v1929_v62  ;;  %v1931_v36 = vpop.eup %1930  ;;  %v962_v26 = vmul.f32 0.5, %v589_v33 }
 0x18e   : > { %1284 = vst [vmem:[%s2458_s26 + $0x58] sm:$0xff] %v1252_v60  ;;  %v1053_v55 = vmul.f32 0.5, %v1021_v3  ;;  %v1023_v12 = vadd.f32 1.0, %v1931_v36 }
 0x18f   : > { %v1054_v11 = vmul.f32 0.5, %v1022_v4 }
 0x190   : > { %1085 = vst [vmem:[%s2418_s9 + $0xa0] sm:$0xff] %v1053_v55  ;;  %v1055_v16 = vmul.f32 0.5, %v1023_v12 }
 0x191   : > { %v1184_v7 = vpop.xlane.xlu1 %1183  ;;  %1086 = vst [vmem:[%s2418_s9 + $0xa8] sm:$0xff] %v1054_v11 }
 0x192   : > { %v1933_v10 = vpop.eup %1932  ;;  %v1693_v58 = vadd.f32 -56.0, %v1184_v7  ;;  %1087 = vst [vmem:[%s2418_s9 + $0xb0] sm:$0xff] %v1055_v16 }
 0x193   : > { %v1935_v18 = vpop.eup %1934  ;;  %v1253_v21 = vmul.f32 %v1933_v10, %v2373_v63  ;;  %v1254_v13 = vmul.f32 %v1933_v10, %v2375_v2  ;;  %v542_v29 = vpop.f32.mrf.mxu0 }
 0x194   : > { %1936 = vrcp.f32 %v1693_v58  ;;  %v1024_v19 = vadd.f32 1.0, %v1935_v18  ;;  %v591_v40 = vpop.f32.mrf.mxu1  ;;  %v963_v2 = vmul.f32 0.5, %v542_v29 }
 0x195   : > { %1285 = vst [vmem:[%s2458_s26 + $0x60] sm:$0xff] %v1253_v21  ;;  %1938 = vtanh.f32 %v961_v24  ;;  %v964_v30 = vmul.f32 0.5, %v591_v40 }
 0x196   : > { %1286 = vst [vmem:[%s2458_s26 + $0x68] sm:$0xff] %v1254_v13  ;;  %v1056_v20 = vmul.f32 0.5, %v1024_v19  ;;  %1940 = vtanh.f32 %v962_v26 }
 0x197   : > { %1942 = vtanh.f32 %v963_v2 }
 0x198   : > { %1088 = vst [vmem:[%s2418_s9 + $0xb8] sm:$0xff] %v1056_v20 }
 0x199   : > { %v1187_v63 = vpop.xlane.xlu2 %1186 }
 0x19a   : > { %v1937_v43 = vpop.eup %1936  ;;  %v1694_v31 = vadd.f32 -56.0, %v1187_v63 }
 0x19b   : > { %v1255_v34 = vmul.f32 %v1937_v43, %v2379_v6  ;;  %v1256_v37 = vmul.f32 %v1937_v43, %v2381_v9  ;;  %v1939_v41 = vpop.eup %1938  ;;  %v545_v25 = vpop.f32.mrf.mxu0 }
 0x19c   : > { %1944 = vrcp.f32 %v1694_v31  ;;  %v1941_v44 = vpop.eup %1940  ;;  %v1025_v45 = vadd.f32 1.0, %v1939_v41  ;;  %v594_v49 = vpop.f32.mrf.mxu1  ;;  %v965_v62 = vmul.f32 0.5, %v545_v25 }
 0x19d   : > { %1287 = vst [vmem:[%s2458_s26 + $0x70] sm:$0xff] %v1255_v34  ;;  %1946 = vtanh.f32 %v964_v30  ;;  %v1026_v47 = vadd.f32 1.0, %v1941_v44  ;;  %v1943_v28 = vpop.eup %1942  ;;  %v966_v3 = vmul.f32 0.5, %v594_v49 }
 0x19e   : > { %1288 = vst [vmem:[%s2458_s26 + $0x78] sm:$0xff] %v1256_v37  ;;  %v1057_v6 = vmul.f32 0.5, %v1025_v45  ;;  %v1027_v51 = vadd.f32 1.0, %v1943_v28 }
 0x19f   : > { %v1058_v48 = vmul.f32 0.5, %v1026_v47 }
 0x1a0   : > { %1089 = vst [vmem:[%s2418_s9 + $0xc0] sm:$0xff] %v1057_v6  ;;  %v1059_v57 = vmul.f32 0.5, %v1027_v51 }
 0x1a1   : > { %v1190_v50 = vpop.xlane.xlu0 %1189  ;;  %1090 = vst [vmem:[%s2418_s9 + $0xc8] sm:$0xff] %v1058_v48 }
 0x1a2   : > { %v1945_v52 = vpop.eup %1944  ;;  %v1695_v9 = vadd.f32 -56.0, %v1190_v50  ;;  %1091 = vst [vmem:[%s2418_s9 + $0xd0] sm:$0xff] %v1059_v57 }
 0x1a3   : > { %v1947_v53 = vpop.eup %1946  ;;  %v1257_v54 = vmul.f32 %v1945_v52, %v2388_v14  ;;  %v1258_v56 = vmul.f32 %v1945_v52, %v2390_v17  ;;  %v547_v4 = vpop.f32.mrf.mxu0 }
 0x1a4   : > { %1948 = vrcp.f32 %v1695_v9  ;;  %v1028_v60 = vadd.f32 1.0, %v1947_v53  ;;  %v596_v14 = vpop.f32.mrf.mxu1  ;;  %v967_v17 = vmul.f32 0.5, %v547_v4 }
 0x1a5   : > { %1289 = vst [vmem:[%s2458_s26 + $0x80] sm:$0xff] %v1257_v54  ;;  %1950 = vtanh.f32 %v965_v62  ;;  %v968_v33 = vmul.f32 0.5, %v596_v14 }
 0x1a6   : > { %1290 = vst [vmem:[%s2458_s26 + $0x88] sm:$0xff] %v1258_v56  ;;  %v1060_v61 = vmul.f32 0.5, %v1028_v60  ;;  %1952 = vtanh.f32 %v966_v3 }
 0x1a7   : > { %1954 = vtanh.f32 %v967_v17 }
 0x1a8   : > { %1092 = vst [vmem:[%s2418_s9 + $0xd8] sm:$0xff] %v1060_v61 }
 0x1a9   : > { %v1193_v5 = vpop.xlane.xlu1 %1192 }
 0x1aa   : > { %v1949_v36 = vpop.eup %1948  ;;  %v1696_v7 = vadd.f32 -56.0, %v1193_v5 }
 0x1ab   : > { %v1259_v55 = vmul.f32 %v1949_v36, %v2394_v23  ;;  %v1260_v10 = vmul.f32 %v1949_v36, %v2396_v27  ;;  %v1951_v58 = vpop.eup %1950 }
 0x1ac   : > { %1956 = vrcp.f32 %v1696_v7  ;;  %v1953_v11 = vpop.eup %1952  ;;  %v1029_v12 = vadd.f32 1.0, %v1951_v58 }
 0x1ad   : > { %1291 = vst [vmem:[%s2458_s26 + $0x90] sm:$0xff] %v1259_v55  ;;  %1958 = vtanh.f32 %v968_v33  ;;  %v1030_v23 = vadd.f32 1.0, %v1953_v11  ;;  %v1955_v18 = vpop.eup %1954 }
 0x1ae   : > { %1292 = vst [vmem:[%s2458_s26 + $0x98] sm:$0xff] %v1260_v10  ;;  %v1061_v21 = vmul.f32 0.5, %v1029_v12  ;;  %v1031_v20 = vadd.f32 1.0, %v1955_v18 }
 0x1af   : > { %v1062_v19 = vmul.f32 0.5, %v1030_v23 }
 0x1b0   : > { %1093 = vst [vmem:[%s2418_s9 + $0xe0] sm:$0xff] %v1061_v21  ;;  %v1063_v40 = vmul.f32 0.5, %v1031_v20 }
 0x1b1   : > { %v1196_v27 = vpop.xlane.xlu2 %1195  ;;  %1094 = vst [vmem:[%s2418_s9 + $0xe8] sm:$0xff] %v1062_v19 }
 0x1b2   : > { %v1957_v13 = vpop.eup %1956  ;;  %v1697_v16 = vadd.f32 -56.0, %v1196_v27  ;;  %1095 = vst [vmem:[%s2418_s9 + $0xf0] sm:$0xff] %v1063_v40 }
 0x1b3   : > { %v1959_v24 = vpop.eup %1958  ;;  %v1261_v26 = vmul.f32 %v1957_v13, %v2400_v38  ;;  %v1262_v29 = vmul.f32 %v1957_v13, %v2402_v42 }
 0x1b4   : > { %1960 = vrcp.f32 %v1697_v16  ;;  %v1032_v63 = vadd.f32 1.0, %v1959_v24 }
 0x1b5   : > { %1293 = vst [vmem:[%s2458_s26 + $0xa0] sm:$0xff] %v1261_v26 }
 0x1b6   : > { %1294 = vst [vmem:[%s2458_s26 + $0xa8] sm:$0xff] %v1262_v29  ;;  %v1064_v2 = vmul.f32 0.5, %v1032_v63 }
 0x1b8   : > { %1096 = vst [vmem:[%s2418_s9 + $0xf8] sm:$0xff] %v1064_v2 }
 0x1b9   : > { %v1199_v30 = vpop.xlane.xlu0 %1198 }
 0x1ba   : > { %1997 = shalt.err (!%p1994_p3)
}
 0x1bb   : > { %s2066_s9 = smov 256   ;;  %s2067_s8 = smov 16   ;;  %v1961_v38 = vpop.eup %1960  ;;  %v1698_v42 = vadd.f32 -56.0, %v1199_v30 }
 0x1bc   : > { %1764 = dma.vmem_to_hbm [thread:$0]  (%p2136_p5), %s1325_s11, 4096, %s1327_s12, %s1306_s13, %s2066_s9, %s2066_s9, %s2067_s8   ;;  %v1263_v43 = vmul.f32 %v1961_v38, %v2410_v59  ;;  %v1264_v31 = vmul.f32 %v1961_v38, %v2412_v0 }
 0x1bd   : > { %1962 = vrcp.f32 %v1698_v42  ;;  %s1341_s12 = scalar_lea.hbm %s2607_s5, %s1761_s30  ;;  %s1342_s13 = sshll.u32 %s2458_s26, 4  ;;  %s1343_s13 = int_to_ptr.vmem [resolvable:$true] %s1342_s13 }
 0x1be   : > { %1295 = vst [vmem:[%s2458_s26 + $0xb0] sm:$0xff] %v1263_v43  ;;  %s1344_s14 = sshll.u32 %s1341_s12, 4  ;;  %s1311_s15 = scalar_lea.sflag [#allocation5], %s2405_s17  ;;  %s1345_s14 = int_to_ptr.hbm [resolvable:$true] %s1344_s14 }
 0x1bf   : > { %1296 = vst [vmem:[%s2458_s26 + $0xb8] sm:$0xff] %v1264_v31  ;;  %s2012_s16 = sshra.s32 %s1345_s14, 4  ;;  %s2018_s25 = scalar_lea.hbm %s2607_s5, 512  ;;  %s2013_s16 = int_to_ptr.hbm [resolvable:$true] %s2012_s16 }
 0x1c0   : > { %s2014_s22 = scalar_lea.hbm %s2013_s16, 256  ;;  %p2019_p9 = scmp.lt.s32.totalorder %s2013_s16, %s2607_s5 }
 0x1c1   : > { %v1202_v34 = vpop.xlane.xlu1 %1201  ;;  %p2015_p4 = scmp.ne.s32.totalorder %s2013_s16, %s2014_s22  ;;  %p2020_p10 = scmp.lt.s32.totalorder %s2018_s25, %s2014_s22 }
 0x1c2   : > { %v1699_v41 = vadd.f32 -56.0, %v1202_v34 }
 0x1c3   : > { %v1963_v37 = vpop.eup %1962  ;;  %p2016_p7 = pnand %p2015_p4, %p2136_p5  ;;  %p2021_p11 = por %p2020_p10, %p2019_p9 }
 0x1c4   : > { %v1265_v44 = vmul.f32 %v1963_v37, %v2422_v15  ;;  %v1266_v45 = vmul.f32 %v1963_v37, %v2424_v22  ;;  %1964 = vrcp.f32 %v1699_v41 }
 0x1c5   : > { %p2017_p8 = pneg %p2016_p7 }
 0x1c6   : > { %1297 = vst [vmem:[%s2458_s26 + $0xc0] sm:$0xff] %v1265_v44 }
 0x1c7   : > { %1298 = vst [vmem:[%s2458_s26 + $0xc8] sm:$0xff] %v1266_v45  ;;  %p2022_p12 = pnand %p2021_p11, %p2017_p8 }
 0x1c9   : > { %v1205_v59 = vpop.xlane.xlu2 %1204 }
 0x1ca   : > { %v1965_v0 = vpop.eup %1964  ;;  %v1700_v47 = vadd.f32 -56.0, %v1205_v59 }
 0x1cb   : > { %v1267_v25 = vmul.f32 %v1965_v0, %v2430_v39  ;;  %v1268_v49 = vmul.f32 %v1965_v0, %v2432_v46 }
 0x1cc   : > { %1966 = vrcp.f32 %v1700_v47 }
 0x1cd   : > { %1299 = vst [vmem:[%s2458_s26 + $0xd0] sm:$0xff] %v1267_v25 }
 0x1ce   : > { %1300 = vst [vmem:[%s2458_s26 + $0xd8] sm:$0xff] %v1268_v49 }
 0x1d1   : > { %v1208_v15 = vpop.xlane.xlu0 %1207 }
 0x1d2   : > { %v1967_v22 = vpop.eup %1966  ;;  %v1701_v28 = vadd.f32 -56.0, %v1208_v15 }
 0x1d3   : > { %v1269_v50 = vmul.f32 %v1967_v22, %v2436_v1  ;;  %v1270_v6 = vmul.f32 %v1967_v22, %v2438_v8 }
 0x1d4   : > { %1968 = vrcp.f32 %v1701_v28 }
 0x1d5   : > { %1301 = vst [vmem:[%s2458_s26 + $0xe0] sm:$0xff] %v1269_v50 }
 0x1d6   : > { %1302 = vst [vmem:[%s2458_s26 + $0xe8] sm:$0xff] %v1270_v6 }
 0x1da   : > { %v1969_v39 = vpop.eup %1968 }
 0x1db   : > { %v1271_v46 = vmul.f32 %v1969_v39, %v2446_v32  ;;  %v1272_v52 = vmul.f32 %v1969_v39, %v2448_v35 }
 0x1dd   : > { %1303 = vst [vmem:[%s2458_s26 + $0xf0] sm:$0xff] %v1271_v46 }
 0x1de   : > { %1304 = vst [vmem:[%s2458_s26 + $0xf8] sm:$0xff] %v1272_v52 }
 0x1df   : > { %2025 = shalt.err (!%p2022_p12)
}
 0x1e0   : > { %1765 = dma.vmem_to_hbm [thread:$0]  (%p2136_p5), %s1343_s13, 4096, %s1345_s14, %s1311_s15, %s2066_s9, %s2066_s9, %s2067_s8  }
 0x1e1 PF: > { %p1775_p13 = scmp.ge.s32.totalorder %s2064_s21, 2  ;;  %s1359_s17 = sand.u32 1, %s2052_s18  }
 0x1e2   : > { %s1360_s26 = scalar_lea.sflag [#allocation3], %s1359_s17 }
 0x1e3   : > { %p1769_p0 = pnand %p1775_p13, %p2140_p6 }
 0x1e5   : > { %p1770_p1 = pneg %p1769_p0 }
 0x1e7   : > { %2043 = dma.done.wait (%p1770_p1), %s1360_s26, 4096  }
 0x1e8   : > { %2045 = vsyncadd (%p1770_p1), %s1360_s26, 4294963200  ;;  %s1370_s10 = scalar_lea.sflag [#allocation5], %s1359_s17 }
 0x1e9   : > { %2047 = dma.done.wait (%p1770_p1), %s1370_s10, 4096  }
 0x1ea   : > { %2049 = vsyncadd (%p1770_p1), %s1370_s10, 4294963200  ;;  %p19_p5 = scmp.ge.s32.totalorder %s2123_s24, 4   ;;  %s2610_s18 = smov %s2056_s19 }
 0x1eb   : > { %s2611_s19 = smov %s2060_s20  ;;  %s2612_s20 = smov %s2134_s27 }
 0x1ec   : > { %s2613_s21 = smov %s2123_s24  ;;  %21 = sbr.rel (!%p19_p5) target bundleno = 5 (0x5), region = 91 }
 0x1f1   :  { %1376 = vsyncpa [#allocation3], 1 }
 0x1f2   :  { %1378 = vsyncpa [#allocation3 + $0x1], 1 }
 0x1f3   :  { %1379 = vsyncpa [#allocation5], 1 }
 0x1f4   :  { %1381 = vsyncpa [#allocation5 + $0x1], 1 }

// kernel: tpu_custom_call.1
= control target key start
LH: loop header
LB: loop body
LE: loop exit
PB: predicated region body
PF: predicated region fallthrough
CT: control target
= control target key end

     0   :  { %11 = vsyncpa [#allocation3], 0  ;;  %s2602_s0 = inlined_call_operand.vmem [shape: bf16[256,32], index: 0, kind: input, shape index: {}]   ;;  %s2603_s1 = inlined_call_operand.vmem [shape: bf16[256,32], index: 1, kind: input, shape index: {}]   ;;  %s2604_s2 = inlined_call_operand.vmem [shape: bf16[256,32], index: 2, kind: input, shape index: {}]   ;;  %s2605_s3 = inlined_call_operand.vmem [shape: bf16[256,32], index: 3, kind: input, shape index: {}]   ;;  %s2606_s4 = inlined_call_operand.hbm [shape: f32[256,256], index: 4, kind: output, shape index: {0}]   ;;  %s2607_s5 = inlined_call_operand.hbm [shape: f32[256,256], index: 5, kind: output, shape index: {1}]  }
   0x1   :  { %13 = vsyncpa [#allocation3 + $0x1], 0 }
   0x2   :  { %14 = vsyncpa [#allocation5], 0 }
   0x3   :  { %16 = vsyncpa [#allocation5 + $0x1], 0  ;;  %s2098_s18 = smov 0   ;;  %s2100_s19 = smov 0  }
   0x4   :  { %s2102_s20 = smov 0   ;;  %s2104_s21 = smov 0  }
   0x5 LB: > { %s2119_s22 = sadd.s32 4294967295, %s2064_s21   ;;  %s1452_s23 = sadd.s32 4294967294, %s2064_s21   ;;  %s2064_s21 = sphi %s2104_s21, %s2613_s21   ;;  %s2060_s20 = sphi %s2102_s20, %s2612_s20   ;;  %s2056_s19 = sphi %s2100_s19, %s2611_s19   ;;  %s2052_s18 = sphi %s2098_s18, %s2610_s18  }
   0x6   : > { %s2123_s24 = sadd.s32 1, %s2064_s21   ;;  %s123_s25 = sadd.s32 1, %s2060_s20 }
   0x7   : > { %s120_s26 = ssub.s32 %s2064_s21, %s2123_s24  ;;  %p133_p0 = scmp.ne.s32.totalorder %s2060_s20, %s2056_s19 }
   0x8   : > { %p121_p1 = scmp.eq.s32.totalorder %s120_s26, 0  ;;  %p134_p2 = scmp.eq.s32.totalorder %s2119_s22, 1 }
   0x9   : > { %p139_p3 = scmp.ne.s32.totalorder %s2056_s19, %s2052_s18  ;;  %p140_p4 = scmp.eq.s32.totalorder %s1452_s23, 1 }
   0xa   : > { %s2134_s27 = scalar_select %p121_p1, %s2060_s20, %s123_s25  }
   0xb   : > { %p2136_p5 = por %p134_p2, %p133_p0  ;;  %p2140_p6 = por %p140_p4, %p139_p3 }
   0xc   : > { %p1455_p7 = scmp.ge.s32.totalorder %s2064_s21, 1  ;;  %p208_p8 = scmp.lt.s32.totalorder %s2064_s21, 3 }
   0xe   : > { %p209_p9 = pnand %p1455_p7, %p208_p8 }
   0xf   : > { %s1458_s17 = sshll.u32 (!%p209_p9), %s2119_s22, 4  ;;  %s1761_s30 = sshll.u32 (!%p209_p9), %s2119_s22, 8 }
  0x10   : > { %212 = sbr.rel (%p209_p9) target bundleno = 481 (0x1e1), region = 36  ;;  %p247_p10 = scmp.lt.s32.totalorder (!%p209_p9), %s1458_s17, 31 }
  0x11   : > { %s1323_s10 = scalar_lea.hbm (!%p209_p9), %s2606_s4, %s1761_s30 }
  0x12   : > { %s1326_s12 = sshll.u32 (!%p209_p9), %s1323_s10, 4  ;;  %s1327_s12 = int_to_ptr.hbm [resolvable:$true] %s1326_s12 }
  0x13   : > { %s1984_s14 = sshra.s32 (!%p209_p9), %s1327_s12, 4  ;;  %s1985_s14 = int_to_ptr.hbm [resolvable:$true] %s1984_s14 }
  0x14   : > { %s1986_s15 = scalar_lea.hbm (!%p209_p9), %s1985_s14, 256  ;;  %p1991_p0 = scmp.lt.s32.totalorder (!%p209_p9), %s1985_s14, %s2606_s4 }
  0x15   : > { %vm428_vm0 = vcmask 261120   ;;  %v1751_v0 = vld [vmem:[%s2605_s3 + $0x38] sm:$0xff]  ;;  %v1750_v4 = vld [vmem:[%s2605_s3 + $0x30] sm:$0xff]  ;;  %v1749_v8 = vld [vmem:[%s2605_s3 + $0x28] sm:$0xff]  ;;  %s2615_s17 = smov (!%p247_p10, %s1458_s17), 31  ;;  %p1987_p11 = scmp.ne.s32.totalorder %s1985_s14, %s1986_s15 }
  0x16   : > { %v1759_v1 = vld [vmem:[%s2605_s3 + $0x78] sm:$0xff]  ;;  %v813_v2 = vsel %vm428_vm0, %v1751_v0, 0  ;;  %v1758_v5 = vld [vmem:[%s2605_s3 + $0x70] sm:$0xff]  ;;  %v810_v6 = vsel %vm428_vm0, %v1750_v4, 0  ;;  %v1757_v9 = vld [vmem:[%s2605_s3 + $0x68] sm:$0xff]  ;;  %v807_v10 = vsel %vm428_vm0, %v1749_v8, 0 }
  0x17   : > { %v837_v3 = vsel %vm428_vm0, %v1759_v1, 0  ;;  %839 = vmatpush.bf16.xpose.msra.mxu2 %v813_v2  ;;  %v834_v7 = vsel %vm428_vm0, %v1758_v5, 0  ;;  %v831_v11 = vsel %vm428_vm0, %v1757_v9, 0  ;;  %v1748_v12 = vld [vmem:[%s2605_s3 + $0x20] sm:$0xff]  ;;  %v1747_v16 = vld [vmem:[%s2605_s3 + $0x18] sm:$0xff]  ;;  %v1746_v20 = vld [vmem:[%s2605_s3 + $0x10] sm:$0xff]  ;;  %p1988_p12 = pnand %p1987_p11, %p2136_p5 }
  0x18   : > { %888 = vmatpush.bf16.xpose.msra.mxu3 %v837_v3  ;;  %v1756_v13 = vld [vmem:[%s2605_s3 + $0x60] sm:$0xff]  ;;  %v804_v14 = vsel %vm428_vm0, %v1748_v12, 0  ;;  %v1755_v17 = vld [vmem:[%s2605_s3 + $0x58] sm:$0xff]  ;;  %v801_v18 = vsel %vm428_vm0, %v1747_v16, 0  ;;  %v1754_v21 = vld [vmem:[%s2605_s3 + $0x50] sm:$0xff]  ;;  %v798_v22 = vsel %vm428_vm0, %v1746_v20, 0 }
  0x19   : > { %v828_v15 = vsel %vm428_vm0, %v1756_v13, 0  ;;  %v825_v19 = vsel %vm428_vm0, %v1755_v17, 0  ;;  %v822_v23 = vsel %vm428_vm0, %v1754_v21, 0  ;;  %v1745_v24 = vld [vmem:[%s2605_s3 + $0x8] sm:$0xff]  ;;  %v1744_v28 = vld [vmem:[%s2605_s3] sm:$0xff]  ;;  %s1459_s6 = sshll.u32 %s2615_s17, 2  ;;  %p1989_p13 = pneg %p1988_p12 }
  0x1a   : > { %v1753_v25 = vld [vmem:[%s2605_s3 + $0x48] sm:$0xff]  ;;  %v795_v26 = vsel %vm428_vm0, %v1745_v24, 0  ;;  %v1752_v29 = vld [vmem:[%s2605_s3 + $0x40] sm:$0xff]  ;;  %v792_v30 = vsel %vm428_vm0, %v1744_v28, 0  ;;  %s2219_s9 = scalar_lea.vmem %s2604_s2, %s1459_s6  ;;  %v1727_v34 = vld [vmem:[%s2603_s1 + $0x38] sm:$0xff]  ;;  %s2308_s25 = scalar_lea.vmem %s2602_s0, %s1459_s6 }
  0x1b   : > { %v819_v27 = vsel %vm428_vm0, %v1753_v25, 0  ;;  %v816_v31 = vsel %vm428_vm0, %v1752_v29, 0  ;;  %v1736_v32 = vld [vmem:[%s2219_s9] sm:$0xff]  ;;  %v1737_v33 = vld [vmem:[%s2219_s9 + $0x8] sm:$0xff]  ;;  %v1735_v35 = vld [vmem:[%s2603_s1 + $0x78] sm:$0xff]  ;;  %v475_v36 = vsel %vm428_vm0, %v1727_v34, 0 }
  0x1c   : > { %v499_v37 = vsel %vm428_vm0, %v1735_v35, 0  ;;  %501 = vmatpush.bf16.xpose.msra.mxu0 %v475_v36  ;;  %v1738_v38 = vld [vmem:[%s2219_s9 + $0x10] sm:$0xff]  ;;  %v1725_v43 = vld [vmem:[%s2603_s1 + $0x28] sm:$0xff]  ;;  %v1739_v47 = vld [vmem:[%s2219_s9 + $0x18] sm:$0xff]  ;;  %s2405_s17 = sand.u32 1, %s2056_s19  }
  0x1d   : > { %550 = vmatpush.bf16.xpose.msra.mxu1 %v499_v37  ;;  %v1726_v39 = vld [vmem:[%s2603_s1 + $0x30] sm:$0xff]  ;;  %v1733_v44 = vld [vmem:[%s2603_s1 + $0x68] sm:$0xff]  ;;  %v469_v45 = vsel %vm428_vm0, %v1725_v43, 0  ;;  %v1724_v48 = vld [vmem:[%s2603_s1 + $0x20] sm:$0xff]  ;;  %s1456_s6 = sshll.u32 %s2405_s17, 8  ;;  %s1306_s13 = scalar_lea.sflag [#allocation3], %s2405_s17 }
  0x1e   : > { %v1734_v40 = vld [vmem:[%s2603_s1 + $0x70] sm:$0xff]  ;;  %v472_v41 = vsel %vm428_vm0, %v1726_v39, 0  ;;  %v493_v46 = vsel %vm428_vm0, %v1733_v44, 0  ;;  %v1732_v49 = vld [vmem:[%s2603_s1 + $0x60] sm:$0xff]  ;;  %v466_v50 = vsel %vm428_vm0, %v1724_v48, 0  ;;  %v1723_v52 = vld [vmem:[%s2603_s1 + $0x18] sm:$0xff] }
  0x1f   : > { %840 = vmatpush.bf16.xpose.msra.mxu2 %v810_v6  ;;  %v496_v42 = vsel %vm428_vm0, %v1734_v40, 0  ;;  %v490_v51 = vsel %vm428_vm0, %v1732_v49, 0  ;;  %v1731_v53 = vld [vmem:[%s2603_s1 + $0x58] sm:$0xff]  ;;  %v463_v54 = vsel %vm428_vm0, %v1723_v52, 0  ;;  %v1740_v56 = vld [vmem:[%s2219_s9 + $0x20] sm:$0xff]  ;;  %v1722_v57 = vld [vmem:[%s2603_s1 + $0x10] sm:$0xff] }
  0x20   : > { %889 = vmatpush.bf16.xpose.msra.mxu3 %v834_v7  ;;  %v487_v55 = vsel %vm428_vm0, %v1731_v53, 0  ;;  %v1730_v58 = vld [vmem:[%s2603_s1 + $0x50] sm:$0xff]  ;;  %v460_v59 = vsel %vm428_vm0, %v1722_v57, 0  ;;  %v1721_v61 = vld [vmem:[%s2603_s1 + $0x8] sm:$0xff]  ;;  %v1720_v2 = vld [vmem:[%s2603_s1] sm:$0xff]  ;;  %s2458_s26 = scalar_lea.vmem [#allocation4], %s1456_s6 }
  0x21   : > { %v484_v60 = vsel %vm428_vm0, %v1730_v58, 0  ;;  %v1729_v62 = vld [vmem:[%s2603_s1 + $0x48] sm:$0xff]  ;;  %v457_v63 = vsel %vm428_vm0, %v1721_v61, 0  ;;  %v1728_v3 = vld [vmem:[%s2603_s1 + $0x40] sm:$0xff]  ;;  %v454_v4 = vsel %vm428_vm0, %v1720_v2, 0  ;;  %v1742_v7 = vld [vmem:[%s2219_s9 + $0x30] sm:$0xff] }
  0x22   : > { %v481_v0 = vsel %vm428_vm0, %v1729_v62, 0  ;;  %v1741_v1 = vld [vmem:[%s2219_s9 + $0x28] sm:$0xff]  ;;  %v478_v5 = vsel %vm428_vm0, %v1728_v3, 0  ;;  %v1712_v6 = vld [vmem:[%s2308_s25] sm:$0xff]  ;;  %v1743_v9 = vld [vmem:[%s2219_s9 + $0x38] sm:$0xff]  ;;  %s2418_s9 = scalar_lea.vmem [#allocation2], %s1456_s6 }
  0x23   : > { %v1713_v8 = vld [vmem:[%s2308_s25 + $0x8] sm:$0xff]  ;;  %s1324_s11 = sshll.u32 %s2418_s9, 4  ;;  %s1325_s11 = int_to_ptr.vmem [resolvable:$true] %s1324_s11 }
  0x24   : > { %502 = vmatpush.bf16.xpose.msra.mxu0 %v472_v41 }
  0x25   : > { %551 = vmatpush.bf16.xpose.msra.mxu1 %v496_v42 }
  0x27   : > { %841 = vmatpush.bf16.xpose.msra.mxu2 %v807_v10  ;;  %v1714_v10 = vld [vmem:[%s2308_s25 + $0x10] sm:$0xff] }
  0x28   : > { %890 = vmatpush.bf16.xpose.msra.mxu3 %v831_v11 }
  0x2c   : > { %503 = vmatpush.bf16.xpose.msra.mxu0 %v469_v45  ;;  %v1717_v45 = vld [vmem:[%s2308_s25 + $0x28] sm:$0xff] }
  0x2d   : > { %552 = vmatpush.bf16.xpose.msra.mxu1 %v493_v46 }
  0x2f   : > { %842 = vmatpush.bf16.xpose.msra.mxu2 %v804_v14 }
  0x30   : > { %891 = vmatpush.bf16.xpose.msra.mxu3 %v828_v15  ;;  %v1715_v15 = vld [vmem:[%s2308_s25 + $0x18] sm:$0xff] }
  0x34   : > { %504 = vmatpush.bf16.xpose.msra.mxu0 %v466_v50 }
  0x35   : > { %553 = vmatpush.bf16.xpose.msra.mxu1 %v490_v51 }
  0x37   : > { %843 = vmatpush.bf16.xpose.msra.mxu2 %v801_v18 }
  0x38   : > { %892 = vmatpush.bf16.xpose.msra.mxu3 %v825_v19 }
  0x3c   : > { %505 = vmatpush.bf16.xpose.msra.mxu0 %v463_v54 }
  0x3d   : > { %554 = vmatpush.bf16.xpose.msra.mxu1 %v487_v55 }
  0x3f   : > { %844 = vmatpush.bf16.xpose.msra.mxu2 %v798_v22 }
  0x40   : > { %893 = vmatpush.bf16.xpose.msra.mxu3 %v822_v23 }
  0x44   : > { %506 = vmatpush.bf16.xpose.msra.mxu0 %v460_v59 }
  0x45   : > { %555 = vmatpush.bf16.xpose.msra.mxu1 %v484_v60  ;;  %v1718_v60 = vld [vmem:[%s2308_s25 + $0x30] sm:$0xff] }
  0x47   : > { %845 = vmatpush.bf16.xpose.msra.mxu2 %v795_v26 }
  0x48   : > { %894 = vmatpush.bf16.xpose.msra.mxu3 %v819_v27 }
  0x4c   : > { %507 = vmatpush.bf16.xpose.msra.mxu0 %v457_v63 }
  0x4d   : > { %556 = vmatpush.bf16.xpose.msra.mxu1 %v481_v0 }
  0x4f   : > { %846 = vmatpush.bf16.xpose.msra.mxu2 %v792_v30  ;;  %v1716_v30 = vld [vmem:[%s2308_s25 + $0x20] sm:$0xff] }
  0x50   : > { %895 = vmatpush.bf16.xpose.msra.mxu3 %v816_v31 }
  0x54   : > { %508 = vmatpush.bf16.xpose.msra.mxu0 %v454_v4 }
  0x55   : > { %557 = vmatpush.bf16.xpose.msra.mxu1 %v478_v5 }
  0x56   : > { %1670 = vmatmul.msk.bf16.vlgmr.msra.gmra.mxu2 %vm428_vm0, %v1736_v32 }
  0x57   : > { %1678 = vmatmul.msk.bf16.vlgmr.msra.gmra.mxu3 %vm428_vm0, %v1736_v32 }
  0x5b   : > { %1558 = vmatmul.msk.bf16.vlgmr.msra.gmra.mxu0 %vm428_vm0, %v1712_v6 }
  0x5c   : > { %1566 = vmatmul.msk.bf16.vlgmr.msra.gmra.mxu1 %vm428_vm0, %v1712_v6 }
  0x66   : > { %1671 = vmatmul.msk.bf16.gmra.mxu2 %vm428_vm0, %v1737_v33 }
  0x67   : > { %1679 = vmatmul.msk.bf16.gmra.mxu3 %vm428_vm0, %v1737_v33 }
  0x6b   : > { %1559 = vmatmul.msk.bf16.gmra.mxu0 %vm428_vm0, %v1713_v8 }
  0x6c   : > { %1567 = vmatmul.msk.bf16.gmra.mxu1 %vm428_vm0, %v1713_v8 }
  0x76   : > { %1672 = vmatmul.msk.bf16.gmra.mxu2 %vm428_vm0, %v1738_v38 }
  0x77   : > { %1680 = vmatmul.msk.bf16.gmra.mxu3 %vm428_vm0, %v1738_v38 }
  0x7b   : > { %1560 = vmatmul.msk.bf16.gmra.mxu0 %vm428_vm0, %v1714_v10 }
  0x7c   : > { %1568 = vmatmul.msk.bf16.gmra.mxu1 %vm428_vm0, %v1714_v10 }
  0x86   : > { %1673 = vmatmul.msk.bf16.gmra.mxu2 %vm428_vm0, %v1739_v47 }
  0x87   : > { %1681 = vmatmul.msk.bf16.gmra.mxu3 %vm428_vm0, %v1739_v47 }
  0x8b   : > { %1561 = vmatmul.msk.bf16.gmra.mxu0 %vm428_vm0, %v1715_v15 }
  0x8c   : > { %1569 = vmatmul.msk.bf16.gmra.mxu1 %vm428_vm0, %v1715_v15 }
  0x96   : > { %1674 = vmatmul.msk.bf16.gmra.mxu2 %vm428_vm0, %v1740_v56 }
  0x97   : > { %1682 = vmatmul.msk.bf16.gmra.mxu3 %vm428_vm0, %v1740_v56 }
  0x9b   : > { %1562 = vmatmul.msk.bf16.gmra.mxu0 %vm428_vm0, %v1716_v30 }
  0x9c   : > { %1570 = vmatmul.msk.bf16.gmra.mxu1 %vm428_vm0, %v1716_v30 }
  0xa6   : > { %1675 = vmatmul.msk.bf16.gmra.mxu2 %vm428_vm0, %v1741_v1 }
  0xa7   : > { %1683 = vmatmul.msk.bf16.gmra.mxu3 %vm428_vm0, %v1741_v1 }
  0xab   : > { %1563 = vmatmul.msk.bf16.gmra.mxu0 %vm428_vm0, %v1717_v45 }
  0xac   : > { %1571 = vmatmul.msk.bf16.gmra.mxu1 %vm428_vm0, %v1717_v45 }
  0xb6   : > { %1676 = vmatmul.msk.bf16.gmra.mxu2 %vm428_vm0, %v1742_v7 }
  0xb7   : > { %1684 = vmatmul.msk.bf16.gmra.mxu3 %vm428_vm0, %v1742_v7 }
  0xbb   : > { %1564 = vmatmul.msk.bf16.gmra.mxu0 %vm428_vm0, %v1718_v60 }
  0xbc   : > { %1572 = vmatmul.msk.bf16.gmra.mxu1 %vm428_vm0, %v1718_v60 }
  0xc6   : > { %1677 = vmatmul.msk.bf16.gmra.mxu2 %vm428_vm0, %v1743_v9 }
  0xc7   : > { %1685 = vmatmul.msk.bf16.gmra.mxu3 %vm428_vm0, %v1743_v9 }
  0xd8   : > { %v510_v30 = vpop.f32.mrf.mxu0 }
  0xd9   : > { %v848_v11 = vpop.f32.mrf.mxu2 }
  0xda   : > { %v897_v12 = vpop.f32.mrf.mxu3  ;;  %v1097_v13 = vmul.f32 1.442695, %v848_v11  ;;  %v1719_v11 = vld [vmem:[%s2308_s25 + $0x38] sm:$0xff]  ;;  %s1990_s25 = scalar_lea.hbm %s2606_s4, 512 }
  0xdb   : > { %v1099_v14 = vmul.f32 1.442695, %v897_v12  ;;  %1565 = vmatmul.msk.bf16.gmra.mxu0 %vm428_vm0, %v1719_v11  ;;  %1573 = vmatmul.msk.bf16.gmra.mxu1 %vm428_vm0, %v1719_v11  ;;  %p1992_p1 = scmp.lt.s32.totalorder %s1990_s25, %s1986_s15 }
  0xdc   : > { %1810 = vpow2.f32 %v1097_v13 }
  0xdd   : > { %1812 = vpow2.f32 %v1099_v14  ;;  %p1993_p2 = por %p1992_p1, %p1991_p0 }
  0xdf   : > { %p1994_p3 = pnand %p1993_p2, %p1989_p13 }
  0xe0   : > { %v512_v45 = vpop.f32.mrf.mxu0 }
  0xe1   : > { %v850_v16 = vpop.f32.mrf.mxu2 }
  0xe2   : > { %v899_v17 = vpop.f32.mrf.mxu3  ;;  %v2328_v18 = vpop.eup %1810  ;;  %v1101_v19 = vmul.f32 1.442695, %v850_v16 }
  0xe3   : > { %v1103_v20 = vmul.f32 1.442695, %v899_v17  ;;  %v2330_v21 = vpop.eup %1812 }
  0xe4   : > { %1814 = vpow2.f32 %v1101_v19  ;;  %v1161_v22 = vadd.f32 %v2330_v21, %v2328_v18 }
  0xe5   : > { %1816 = vpow2.f32 %v1103_v20 }
  0xe6   : > { %1162 = vadd.xlane.f32.xlu0 %v1161_v22 }
  0xe9   : > { %v853_v23 = vpop.f32.mrf.mxu2 }
  0xea   : > { %v902_v24 = vpop.f32.mrf.mxu3  ;;  %v2334_v25 = vpop.eup %1814  ;;  %v1105_v26 = vmul.f32 1.442695, %v853_v23 }
  0xeb   : > { %v1107_v27 = vmul.f32 1.442695, %v902_v24  ;;  %v2336_v28 = vpop.eup %1816 }
  0xec   : > { %1818 = vpow2.f32 %v1105_v26  ;;  %v1164_v29 = vadd.f32 %v2336_v28, %v2334_v25 }
  0xed   : > { %1820 = vpow2.f32 %v1107_v27 }
  0xee   : > { %1165 = vadd.xlane.f32.xlu0 %v1164_v29 }
  0xf1   : > { %v855_v31 = vpop.f32.mrf.mxu2 }
  0xf2   : > { %v904_v32 = vpop.f32.mrf.mxu3  ;;  %v2343_v33 = vpop.eup %1818  ;;  %v1109_v34 = vmul.f32 1.442695, %v855_v31 }
  0xf3   : > { %v1111_v35 = vmul.f32 1.442695, %v904_v32  ;;  %v2345_v36 = vpop.eup %1820  ;;  %v559_v31 = vpop.f32.mrf.mxu1  ;;  %v937_v32 = vmul.f32 0.5, %v510_v30 }
  0xf4   : > { %1822 = vpow2.f32 %v1109_v34  ;;  %v1167_v37 = vadd.f32 %v2345_v36, %v2343_v33  ;;  %v938_v34 = vmul.f32 0.5, %v559_v31 }
  0xf5   : > { %1824 = vpow2.f32 %v1111_v35 }
  0xf6   : > { %1168 = vadd.xlane.f32.xlu1 %v1167_v37 }
  0xf9   : > { %v858_v38 = vpop.f32.mrf.mxu2 }
  0xfa   : > { %v907_v39 = vpop.f32.mrf.mxu3  ;;  %v2349_v40 = vpop.eup %1822  ;;  %v1113_v41 = vmul.f32 1.442695, %v858_v38 }
  0xfb   : > { %v1115_v42 = vmul.f32 1.442695, %v907_v39  ;;  %v2351_v43 = vpop.eup %1824 }
  0xfc   : > { %1826 = vpow2.f32 %v1113_v41  ;;  %v1170_v44 = vadd.f32 %v2351_v43, %v2349_v40 }
  0xfd   : > { %1828 = vpow2.f32 %v1115_v42 }
  0xfe   : > { %1171 = vadd.xlane.f32.xlu1 %v1170_v44 }
 0x101   : > { %v860_v46 = vpop.f32.mrf.mxu2 }
 0x102   : > { %v909_v47 = vpop.f32.mrf.mxu3  ;;  %v2358_v48 = vpop.eup %1826  ;;  %v1117_v49 = vmul.f32 1.442695, %v860_v46 }
 0x103   : > { %v1119_v50 = vmul.f32 1.442695, %v909_v47  ;;  %v2360_v51 = vpop.eup %1828  ;;  %v561_v46 = vpop.f32.mrf.mxu1 }
 0x104   : > { %1830 = vpow2.f32 %v1117_v49  ;;  %v1173_v52 = vadd.f32 %v2360_v51, %v2358_v48  ;;  %v939_v49 = vmul.f32 0.5, %v512_v45 }
 0x105   : > { %1832 = vpow2.f32 %v1119_v50  ;;  %v940_v50 = vmul.f32 0.5, %v561_v46 }
 0x106   : > { %1174 = vadd.xlane.f32.xlu2 %v1173_v52 }
 0x109   : > { %v863_v53 = vpop.f32.mrf.mxu2 }
 0x10a   : > { %v912_v54 = vpop.f32.mrf.mxu3  ;;  %v2364_v55 = vpop.eup %1830  ;;  %v1121_v56 = vmul.f32 1.442695, %v863_v53 }
 0x10b   : > { %v1123_v57 = vmul.f32 1.442695, %v912_v54  ;;  %v2366_v58 = vpop.eup %1832 }
 0x10c   : > { %1834 = vpow2.f32 %v1121_v56  ;;  %v1176_v59 = vadd.f32 %v2366_v58, %v2364_v55 }
 0x10d   : > { %1836 = vpow2.f32 %v1123_v57 }
 0x10e   : > { %1177 = vadd.xlane.f32.xlu2 %v1176_v59 }
 0x111   : > { %v865_v61 = vpop.f32.mrf.mxu2 }
 0x112   : > { %v914_v62 = vpop.f32.mrf.mxu3  ;;  %v2373_v63 = vpop.eup %1834  ;;  %v1125_v0 = vmul.f32 1.442695, %v865_v61 }
 0x113   : > { %v1127_v1 = vmul.f32 1.442695, %v914_v62  ;;  %v2375_v2 = vpop.eup %1836 }
 0x114   : > { %1838 = vpow2.f32 %v1125_v0  ;;  %v1179_v3 = vadd.f32 %v2375_v2, %v2373_v63 }
 0x115   : > { %1840 = vpow2.f32 %v1127_v1 }
 0x116   : > { %1180 = vadd.xlane.f32.xlu0 %v1179_v3 }
 0x119   : > { %v868_v4 = vpop.f32.mrf.mxu2 }
 0x11a   : > { %v917_v5 = vpop.f32.mrf.mxu3  ;;  %v2379_v6 = vpop.eup %1838  ;;  %v1129_v7 = vmul.f32 1.442695, %v868_v4 }
 0x11b   : > { %v1131_v8 = vmul.f32 1.442695, %v917_v5  ;;  %v2381_v9 = vpop.eup %1840 }
 0x11c   : > { %1842 = vpow2.f32 %v1129_v7  ;;  %v1182_v10 = vadd.f32 %v2381_v9, %v2379_v6 }
 0x11d   : > { %1844 = vpow2.f32 %v1131_v8  ;;  %v515_v8 = vpop.f32.mrf.mxu0 }
 0x11e   : > { %1183 = vadd.xlane.f32.xlu1 %v1182_v10  ;;  %v564_v10 = vpop.f32.mrf.mxu1 }
 0x11f   : > { %v942_v30 = vmul.f32 0.5, %v564_v10 }
 0x121   : > { %v870_v12 = vpop.f32.mrf.mxu2 }
 0x122   : > { %v919_v13 = vpop.f32.mrf.mxu3  ;;  %v2388_v14 = vpop.eup %1842  ;;  %v1133_v15 = vmul.f32 1.442695, %v870_v12 }
 0x123   : > { %v1135_v16 = vmul.f32 1.442695, %v919_v13  ;;  %v2390_v17 = vpop.eup %1844 }
 0x124   : > { %1846 = vpow2.f32 %v1133_v15  ;;  %v1185_v19 = vadd.f32 %v2390_v17, %v2388_v14 }
 0x125   : > { %1848 = vpow2.f32 %v1135_v16  ;;  %v517_v31 = vpop.f32.mrf.mxu0 }
 0x126   : > { %1186 = vadd.xlane.f32.xlu2 %v1185_v19 }
 0x129   : > { %v873_v20 = vpop.f32.mrf.mxu2 }
 0x12a   : > { %v922_v22 = vpop.f32.mrf.mxu3  ;;  %v2394_v23 = vpop.eup %1846  ;;  %v1137_v24 = vmul.f32 1.442695, %v873_v20 }
 0x12b   : > { %v1139_v26 = vmul.f32 1.442695, %v922_v22  ;;  %v2396_v27 = vpop.eup %1848 }
 0x12c   : > { %1850 = vpow2.f32 %v1137_v24  ;;  %v1188_v29 = vadd.f32 %v2396_v27, %v2394_v23 }
 0x12d   : > { %1852 = vpow2.f32 %v1139_v26 }
 0x12e   : > { %1189 = vadd.xlane.f32.xlu0 %v1188_v29  ;;  %1854 = vtanh.f32 %v937_v32  ;;  %v941_v29 = vmul.f32 0.5, %v515_v8  ;;  %v566_v32 = vpop.f32.mrf.mxu1 }
 0x12f   : > { %1856 = vtanh.f32 %v938_v34  ;;  %v944_v45 = vmul.f32 0.5, %v566_v32 }
 0x131   : > { %v875_v35 = vpop.f32.mrf.mxu2 }
 0x132   : > { %v924_v37 = vpop.f32.mrf.mxu3  ;;  %v2400_v38 = vpop.eup %1850  ;;  %v1141_v39 = vmul.f32 1.442695, %v875_v35 }
 0x133   : > { %v1143_v41 = vmul.f32 1.442695, %v924_v37  ;;  %v2402_v42 = vpop.eup %1852  ;;  %v943_v37 = vmul.f32 0.5, %v517_v31 }
 0x134   : > { %1858 = vpow2.f32 %v1141_v39  ;;  %v1191_v44 = vadd.f32 %v2402_v42, %v2400_v38  ;;  %v1855_v47 = vpop.eup %1854 }
 0x135   : > { %1860 = vpow2.f32 %v1143_v41  ;;  %v1857_v52 = vpop.eup %1856  ;;  %v1001_v53 = vadd.f32 1.0, %v1855_v47 }
 0x136   : > { %1192 = vadd.xlane.f32.xlu1 %v1191_v44  ;;  %v1002_v57 = vadd.f32 1.0, %v1857_v52  ;;  %1862 = vtanh.f32 %v939_v49 }
 0x137   : > { %v1033_v62 = vmul.f32 0.5, %v1001_v53  ;;  %1864 = vtanh.f32 %v940_v50 }
 0x138   : > { %v1034_v1 = vmul.f32 0.5, %v1002_v57 }
 0x139   : > { %v878_v54 = vpop.f32.mrf.mxu2  ;;  %1065 = vst [vmem:[%s2418_s9] sm:$0xff] %v1033_v62 }
 0x13a   : > { %v927_v56 = vpop.f32.mrf.mxu3  ;;  %v2410_v59 = vpop.eup %1858  ;;  %v1145_v60 = vmul.f32 1.442695, %v878_v54  ;;  %1066 = vst [vmem:[%s2418_s9 + $0x8] sm:$0xff] %v1034_v1 }
 0x13b   : > { %v1147_v61 = vmul.f32 1.442695, %v927_v56  ;;  %v2412_v0 = vpop.eup %1860  ;;  %v520_v54 = vpop.f32.mrf.mxu0 }
 0x13c   : > { %1866 = vpow2.f32 %v1145_v60  ;;  %v1194_v3 = vadd.f32 %v2412_v0, %v2410_v59  ;;  %v1863_v4 = vpop.eup %1862  ;;  %v569_v56 = vpop.f32.mrf.mxu1 }
 0x13d   : > { %1868 = vpow2.f32 %v1147_v61  ;;  %v1865_v5 = vpop.eup %1864  ;;  %v1003_v7 = vadd.f32 1.0, %v1863_v4 }
 0x13e   : > { %1195 = vadd.xlane.f32.xlu2 %v1194_v3  ;;  %v1004_v13 = vadd.f32 1.0, %v1865_v5 }
 0x13f   : > { %v1035_v20 = vmul.f32 0.5, %v1003_v7 }
 0x140   : > { %v1036_v24 = vmul.f32 0.5, %v1004_v13 }
 0x141   : > { %v880_v11 = vpop.f32.mrf.mxu2  ;;  %1067 = vst [vmem:[%s2418_s9 + $0x10] sm:$0xff] %v1035_v20 }
 0x142   : > { %v929_v12 = vpop.f32.mrf.mxu3  ;;  %v2422_v15 = vpop.eup %1866  ;;  %v1149_v16 = vmul.f32 1.442695, %v880_v11  ;;  %1068 = vst [vmem:[%s2418_s9 + $0x18] sm:$0xff] %v1036_v24 }
 0x143   : > { %v1151_v19 = vmul.f32 1.442695, %v929_v12  ;;  %v2424_v22 = vpop.eup %1868  ;;  %v522_v24 = vpop.f32.mrf.mxu0 }
 0x144   : > { %1870 = vpow2.f32 %v1149_v16  ;;  %v1197_v26 = vadd.f32 %v2424_v22, %v2422_v15  ;;  %v945_v16 = vmul.f32 0.5, %v520_v54 }
 0x145   : > { %1872 = vpow2.f32 %v1151_v19  ;;  %v946_v19 = vmul.f32 0.5, %v569_v56 }
 0x146   : > { %1198 = vadd.xlane.f32.xlu0 %v1197_v26  ;;  %1874 = vtanh.f32 %v941_v29  ;;  %v571_v26 = vpop.f32.mrf.mxu1 }
 0x147   : > { %1876 = vtanh.f32 %v942_v30  ;;  %v947_v30 = vmul.f32 0.5, %v522_v24  ;;  %v948_v31 = vmul.f32 0.5, %v571_v26 }
 0x148   : > { %1878 = vtanh.f32 %v943_v37 }
 0x149   : > { %v883_v34 = vpop.f32.mrf.mxu2 }
 0x14a   : > { %v932_v35 = vpop.f32.mrf.mxu3  ;;  %v2430_v39 = vpop.eup %1870  ;;  %v1153_v41 = vmul.f32 1.442695, %v883_v34 }
 0x14b   : > { %v1155_v44 = vmul.f32 1.442695, %v932_v35  ;;  %v2432_v46 = vpop.eup %1872 }
 0x14c   : > { %1880 = vpow2.f32 %v1153_v41  ;;  %v1200_v47 = vadd.f32 %v2432_v46, %v2430_v39  ;;  %v1875_v49 = vpop.eup %1874 }
 0x14d   : > { %1882 = vpow2.f32 %v1155_v44  ;;  %v1877_v50 = vpop.eup %1876  ;;  %v1005_v52 = vadd.f32 1.0, %v1875_v49  ;;  %v525_v49 = vpop.f32.mrf.mxu0 }
 0x14e   : > { %1201 = vadd.xlane.f32.xlu1 %v1200_v47  ;;  %1884 = vtanh.f32 %v944_v45  ;;  %v1006_v53 = vadd.f32 1.0, %v1877_v50  ;;  %v1879_v57 = vpop.eup %1878  ;;  %v574_v50 = vpop.f32.mrf.mxu1 }
 0x14f   : > { %v1037_v62 = vmul.f32 0.5, %v1005_v52  ;;  %v1007_v7 = vadd.f32 1.0, %v1879_v57 }
 0x150   : > { %v1038_v5 = vmul.f32 0.5, %v1006_v53 }
 0x151   : > { %v885_v60 = vpop.f32.mrf.mxu2  ;;  %1069 = vst [vmem:[%s2418_s9 + $0x20] sm:$0xff] %v1037_v62  ;;  %v1039_v12 = vmul.f32 0.5, %v1007_v7 }
 0x152   : > { %v934_v61 = vpop.f32.mrf.mxu3  ;;  %v2436_v1 = vpop.eup %1880  ;;  %v1157_v3 = vmul.f32 1.442695, %v885_v60  ;;  %1070 = vst [vmem:[%s2418_s9 + $0x28] sm:$0xff] %v1038_v5 }
 0x153   : > { %v1159_v4 = vmul.f32 1.442695, %v934_v61  ;;  %v2438_v8 = vpop.eup %1882  ;;  %1071 = vst [vmem:[%s2418_s9 + $0x30] sm:$0xff] %v1039_v12  ;;  %v950_v12 = vmul.f32 0.5, %v574_v50 }
 0x154   : > { %v1885_v10 = vpop.eup %1884  ;;  %1886 = vpow2.f32 %v1157_v3  ;;  %v1203_v11 = vadd.f32 %v2438_v8, %v2436_v1 }
 0x155   : > { %1888 = vpow2.f32 %v1159_v4  ;;  %v1008_v13 = vadd.f32 1.0, %v1885_v10 }
 0x156   : > { %1204 = vadd.xlane.f32.xlu2 %v1203_v11  ;;  %1890 = vtanh.f32 %v945_v16  ;;  %v949_v11 = vmul.f32 0.5, %v525_v49 }
 0x157   : > { %v1040_v20 = vmul.f32 0.5, %v1008_v13  ;;  %1892 = vtanh.f32 %v946_v19 }
 0x158   : > { %1894 = vtanh.f32 %v947_v30 }
 0x159   : > { %v1163_v29 = vpop.xlane.xlu0 %1162  ;;  %1072 = vst [vmem:[%s2418_s9 + $0x38] sm:$0xff] %v1040_v20 }
 0x15a   : > { %v2446_v32 = vpop.eup %1886  ;;  %v1686_v34 = vadd.f32 -56.0, %v1163_v29 }
 0x15b   : > { %v2448_v35 = vpop.eup %1888 }
 0x15c   : > { %1896 = vrcp.f32 %v1686_v34  ;;  %v1206_v37 = vadd.f32 %v2448_v35, %v2446_v32  ;;  %v1891_v41 = vpop.eup %1890 }
 0x15d   : > { %1898 = vtanh.f32 %v948_v31  ;;  %v1893_v44 = vpop.eup %1892  ;;  %v1009_v45 = vadd.f32 1.0, %v1891_v41 }
 0x15e   : > { %1207 = vadd.xlane.f32.xlu0 %v1206_v37  ;;  %v1010_v47 = vadd.f32 1.0, %v1893_v44  ;;  %v1895_v52 = vpop.eup %1894 }
 0x15f   : > { %v1041_v54 = vmul.f32 0.5, %v1009_v45  ;;  %v1011_v61 = vadd.f32 1.0, %v1895_v52 }
 0x160   : > { %v1042_v60 = vmul.f32 0.5, %v1010_v47 }
 0x161   : > { %v1166_v53 = vpop.xlane.xlu0 %1165  ;;  %1073 = vst [vmem:[%s2418_s9 + $0x40] sm:$0xff] %v1041_v54  ;;  %v1043_v5 = vmul.f32 0.5, %v1011_v61 }
 0x162   : > { %v1897_v56 = vpop.eup %1896  ;;  %v1687_v57 = vadd.f32 -56.0, %v1166_v53  ;;  %1074 = vst [vmem:[%s2418_s9 + $0x48] sm:$0xff] %v1042_v60 }
 0x163   : > { %v1899_v62 = vpop.eup %1898  ;;  %v1241_v3 = vmul.f32 %v1897_v56, %v2328_v18  ;;  %v1242_v4 = vmul.f32 %v1897_v56, %v2330_v21  ;;  %1075 = vst [vmem:[%s2418_s9 + $0x50] sm:$0xff] %v1043_v5  ;;  %v527_v18 = vpop.f32.mrf.mxu0 }
 0x164   : > { %1900 = vrcp.f32 %v1687_v57  ;;  %v1012_v7 = vadd.f32 1.0, %v1899_v62  ;;  %v576_v21 = vpop.f32.mrf.mxu1  ;;  %v951_v16 = vmul.f32 0.5, %v527_v18 }
 0x165   : > { %1273 = vst [vmem:[%s2458_s26] sm:$0xff] %v1241_v3  ;;  %1902 = vtanh.f32 %v949_v11  ;;  %v952_v19 = vmul.f32 0.5, %v576_v21 }
 0x166   : > { %1274 = vst [vmem:[%s2458_s26 + $0x8] sm:$0xff] %v1242_v4  ;;  %v1044_v10 = vmul.f32 0.5, %v1012_v7  ;;  %1904 = vtanh.f32 %v950_v12 }
 0x167   : > { %1906 = vtanh.f32 %v951_v16 }
 0x168   : > { %1076 = vst [vmem:[%s2418_s9 + $0x58] sm:$0xff] %v1044_v10 }
 0x169   : > { %v1169_v13 = vpop.xlane.xlu1 %1168 }
 0x16a   : > { %v1901_v20 = vpop.eup %1900  ;;  %v1688_v24 = vadd.f32 -56.0, %v1169_v13 }
 0x16b   : > { %v1243_v26 = vmul.f32 %v1901_v20, %v2334_v25  ;;  %v1244_v29 = vmul.f32 %v1901_v20, %v2336_v28  ;;  %v1903_v30 = vpop.eup %1902  ;;  %v530_v41 = vpop.f32.mrf.mxu0 }
 0x16c   : > { %1908 = vrcp.f32 %v1688_v24  ;;  %v1905_v31 = vpop.eup %1904  ;;  %v1013_v34 = vadd.f32 1.0, %v1903_v30  ;;  %v579_v44 = vpop.f32.mrf.mxu1  ;;  %v953_v62 = vmul.f32 0.5, %v530_v41 }
 0x16d   : > { %1275 = vst [vmem:[%s2458_s26 + $0x10] sm:$0xff] %v1243_v26  ;;  %1910 = vtanh.f32 %v952_v19  ;;  %v1014_v37 = vadd.f32 1.0, %v1905_v31  ;;  %v1907_v45 = vpop.eup %1906  ;;  %v954_v3 = vmul.f32 0.5, %v579_v44 }
 0x16e   : > { %1276 = vst [vmem:[%s2458_s26 + $0x18] sm:$0xff] %v1244_v29  ;;  %v1045_v25 = vmul.f32 0.5, %v1013_v34  ;;  %v1015_v52 = vadd.f32 1.0, %v1907_v45 }
 0x16f   : > { %v1046_v50 = vmul.f32 0.5, %v1014_v37 }
 0x170   : > { %1077 = vst [vmem:[%s2418_s9 + $0x60] sm:$0xff] %v1045_v25  ;;  %v1047_v57 = vmul.f32 0.5, %v1015_v52 }
 0x171   : > { %v1172_v47 = vpop.xlane.xlu1 %1171  ;;  %1078 = vst [vmem:[%s2418_s9 + $0x68] sm:$0xff] %v1046_v50 }
 0x172   : > { %v1909_v49 = vpop.eup %1908  ;;  %v1689_v28 = vadd.f32 -56.0, %v1172_v47  ;;  %1079 = vst [vmem:[%s2418_s9 + $0x70] sm:$0xff] %v1047_v57 }
 0x173   : > { %v1911_v53 = vpop.eup %1910  ;;  %v1245_v54 = vmul.f32 %v1909_v49, %v2343_v33  ;;  %v1246_v56 = vmul.f32 %v1909_v49, %v2345_v36  ;;  %v532_v4 = vpop.f32.mrf.mxu0 }
 0x174   : > { %1912 = vrcp.f32 %v1689_v28  ;;  %v1016_v60 = vadd.f32 1.0, %v1911_v53  ;;  %v581_v5 = vpop.f32.mrf.mxu1  ;;  %v955_v36 = vmul.f32 0.5, %v532_v4 }
 0x175   : > { %1277 = vst [vmem:[%s2458_s26 + $0x20] sm:$0xff] %v1245_v54  ;;  %1914 = vtanh.f32 %v953_v62  ;;  %v956_v7 = vmul.f32 0.5, %v581_v5 }
 0x176   : > { %1278 = vst [vmem:[%s2458_s26 + $0x28] sm:$0xff] %v1246_v56  ;;  %v1048_v61 = vmul.f32 0.5, %v1016_v60  ;;  %1916 = vtanh.f32 %v954_v3 }
 0x177   : > { %1918 = vtanh.f32 %v955_v36 }
 0x178   : > { %1080 = vst [vmem:[%s2418_s9 + $0x78] sm:$0xff] %v1048_v61 }
 0x179   : > { %v1175_v33 = vpop.xlane.xlu2 %1174 }
 0x17a   : > { %v1913_v10 = vpop.eup %1912  ;;  %v1690_v11 = vadd.f32 -56.0, %v1175_v33 }
 0x17b   : > { %v1247_v12 = vmul.f32 %v1913_v10, %v2349_v40  ;;  %v1248_v18 = vmul.f32 %v1913_v10, %v2351_v43  ;;  %v1915_v21 = vpop.eup %1914  ;;  %v535_v20 = vpop.f32.mrf.mxu0 }
 0x17c   : > { %1920 = vrcp.f32 %v1690_v11  ;;  %v1917_v13 = vpop.eup %1916  ;;  %v1017_v16 = vadd.f32 1.0, %v1915_v21  ;;  %v584_v24 = vpop.f32.mrf.mxu1  ;;  %v957_v49 = vmul.f32 0.5, %v535_v20 }
 0x17d   : > { %1279 = vst [vmem:[%s2458_s26 + $0x30] sm:$0xff] %v1247_v12  ;;  %1922 = vtanh.f32 %v956_v7  ;;  %v1018_v19 = vadd.f32 1.0, %v1917_v13  ;;  %v1919_v26 = vpop.eup %1918  ;;  %v958_v28 = vmul.f32 0.5, %v584_v24 }
 0x17e   : > { %1280 = vst [vmem:[%s2458_s26 + $0x38] sm:$0xff] %v1248_v18  ;;  %v1049_v40 = vmul.f32 0.5, %v1017_v16  ;;  %v1019_v34 = vadd.f32 1.0, %v1919_v26 }
 0x17f   : > { %v1050_v31 = vmul.f32 0.5, %v1018_v19 }
 0x180   : > { %1081 = vst [vmem:[%s2418_s9 + $0x80] sm:$0xff] %v1049_v40  ;;  %v1051_v45 = vmul.f32 0.5, %v1019_v34 }
 0x181   : > { %v1178_v29 = vpop.xlane.xlu2 %1177  ;;  %1082 = vst [vmem:[%s2418_s9 + $0x88] sm:$0xff] %v1050_v31 }
 0x182   : > { %v1921_v30 = vpop.eup %1920  ;;  %v1691_v43 = vadd.f32 -56.0, %v1178_v29  ;;  %1083 = vst [vmem:[%s2418_s9 + $0x90] sm:$0xff] %v1051_v45 }
 0x183   : > { %v1923_v37 = vpop.eup %1922  ;;  %v1249_v41 = vmul.f32 %v1921_v30, %v2358_v48  ;;  %v1250_v44 = vmul.f32 %v1921_v30, %v2360_v51  ;;  %v537_v50 = vpop.f32.mrf.mxu0 }
 0x184   : > { %1924 = vrcp.f32 %v1691_v43  ;;  %v1020_v47 = vadd.f32 1.0, %v1923_v37  ;;  %v586_v52 = vpop.f32.mrf.mxu1  ;;  %v959_v51 = vmul.f32 0.5, %v537_v50 }
 0x185   : > { %1281 = vst [vmem:[%s2458_s26 + $0x40] sm:$0xff] %v1249_v41  ;;  %1926 = vtanh.f32 %v957_v49  ;;  %v960_v53 = vmul.f32 0.5, %v586_v52 }
 0x186   : > { %1282 = vst [vmem:[%s2458_s26 + $0x48] sm:$0xff] %v1250_v44  ;;  %v1052_v25 = vmul.f32 0.5, %v1020_v47  ;;  %1928 = vtanh.f32 %v958_v28 }
 0x187   : > { %1930 = vtanh.f32 %v959_v51 }
 0x188   : > { %1084 = vst [vmem:[%s2418_s9 + $0x98] sm:$0xff] %v1052_v25 }
 0x189   : > { %v1181_v48 = vpop.xlane.xlu0 %1180 }
 0x18a   : > { %v1925_v54 = vpop.eup %1924  ;;  %v1692_v56 = vadd.f32 -56.0, %v1181_v48 }
 0x18b   : > { %v1251_v57 = vmul.f32 %v1925_v54, %v2364_v55  ;;  %v1252_v60 = vmul.f32 %v1925_v54, %v2366_v58  ;;  %v1927_v61 = vpop.eup %1926  ;;  %v540_v5 = vpop.f32.mrf.mxu0 }
 0x18c   : > { %1932 = vrcp.f32 %v1692_v56  ;;  %v1929_v62 = vpop.eup %1928  ;;  %v1021_v3 = vadd.f32 1.0, %v1927_v61  ;;  %v589_v33 = vpop.f32.mrf.mxu1  ;;  %v961_v24 = vmul.f32 0.5, %v540_v5 }
 0x18d   : > { %1283 = vst [vmem:[%s2458_s26 + $0x50] sm:$0xff] %v1251_v57  ;;  %1934 = vtanh.f32 %v960_v53  ;;  %v1022_v4 = vadd.f32 1.0, %v1929_v62  ;;  %v1931_v36 = vpop.eup %1930  ;;  %v962_v26 = vmul.f32 0.5, %v589_v33 }
 0x18e   : > { %1284 = vst [vmem:[%s2458_s26 + $0x58] sm:$0xff] %v1252_v60  ;;  %v1053_v55 = vmul.f32 0.5, %v1021_v3  ;;  %v1023_v12 = vadd.f32 1.0, %v1931_v36 }
 0x18f   : > { %v1054_v11 = vmul.f32 0.5, %v1022_v4 }
 0x190   : > { %1085 = vst [vmem:[%s2418_s9 + $0xa0] sm:$0xff] %v1053_v55  ;;  %v1055_v16 = vmul.f32 0.5, %v1023_v12 }
 0x191   : > { %v1184_v7 = vpop.xlane.xlu1 %1183  ;;  %1086 = vst [vmem:[%s2418_s9 + $0xa8] sm:$0xff] %v1054_v11 }
 0x192   : > { %v1933_v10 = vpop.eup %1932  ;;  %v1693_v58 = vadd.f32 -56.0, %v1184_v7  ;;  %1087 = vst [vmem:[%s2418_s9 + $0xb0] sm:$0xff] %v1055_v16 }
 0x193   : > { %v1935_v18 = vpop.eup %1934  ;;  %v1253_v21 = vmul.f32 %v1933_v10, %v2373_v63  ;;  %v1254_v13 = vmul.f32 %v1933_v10, %v2375_v2  ;;  %v542_v29 = vpop.f32.mrf.mxu0 }
 0x194   : > { %1936 = vrcp.f32 %v1693_v58  ;;  %v1024_v19 = vadd.f32 1.0, %v1935_v18  ;;  %v591_v40 = vpop.f32.mrf.mxu1  ;;  %v963_v2 = vmul.f32 0.5, %v542_v29 }
 0x195   : > { %1285 = vst [vmem:[%s2458_s26 + $0x60] sm:$0xff] %v1253_v21  ;;  %1938 = vtanh.f32 %v961_v24  ;;  %v964_v30 = vmul.f32 0.5, %v591_v40 }
 0x196   : > { %1286 = vst [vmem:[%s2458_s26 + $0x68] sm:$0xff] %v1254_v13  ;;  %v1056_v20 = vmul.f32 0.5, %v1024_v19  ;;  %1940 = vtanh.f32 %v962_v26 }
 0x197   : > { %1942 = vtanh.f32 %v963_v2 }
 0x198   : > { %1088 = vst [vmem:[%s2418_s9 + $0xb8] sm:$0xff] %v1056_v20 }
 0x199   : > { %v1187_v63 = vpop.xlane.xlu2 %1186 }
 0x19a   : > { %v1937_v43 = vpop.eup %1936  ;;  %v1694_v31 = vadd.f32 -56.0, %v1187_v63 }
 0x19b   : > { %v1255_v34 = vmul.f32 %v1937_v43, %v2379_v6  ;;  %v1256_v37 = vmul.f32 %v1937_v43, %v2381_v9  ;;  %v1939_v41 = vpop.eup %1938  ;;  %v545_v25 = vpop.f32.mrf.mxu0 }
 0x19c   : > { %1944 = vrcp.f32 %v1694_v31  ;;  %v1941_v44 = vpop.eup %1940  ;;  %v1025_v45 = vadd.f32 1.0, %v1939_v41  ;;  %v594_v49 = vpop.f32.mrf.mxu1  ;;  %v965_v62 = vmul.f32 0.5, %v545_v25 }
 0x19d   : > { %1287 = vst [vmem:[%s2458_s26 + $0x70] sm:$0xff] %v1255_v34  ;;  %1946 = vtanh.f32 %v964_v30  ;;  %v1026_v47 = vadd.f32 1.0, %v1941_v44  ;;  %v1943_v28 = vpop.eup %1942  ;;  %v966_v3 = vmul.f32 0.5, %v594_v49 }
 0x19e   : > { %1288 = vst [vmem:[%s2458_s26 + $0x78] sm:$0xff] %v1256_v37  ;;  %v1057_v6 = vmul.f32 0.5, %v1025_v45  ;;  %v1027_v51 = vadd.f32 1.0, %v1943_v28 }
 0x19f   : > { %v1058_v48 = vmul.f32 0.5, %v1026_v47 }
 0x1a0   : > { %1089 = vst [vmem:[%s2418_s9 + $0xc0] sm:$0xff] %v1057_v6  ;;  %v1059_v57 = vmul.f32 0.5, %v1027_v51 }
 0x1a1   : > { %v1190_v50 = vpop.xlane.xlu0 %1189  ;;  %1090 = vst [vmem:[%s2418_s9 + $0xc8] sm:$0xff] %v1058_v48 }
 0x1a2   : > { %v1945_v52 = vpop.eup %1944  ;;  %v1695_v9 = vadd.f32 -56.0, %v1190_v50  ;;  %1091 = vst [vmem:[%s2418_s9 + $0xd0] sm:$0xff] %v1059_v57 }
 0x1a3   : > { %v1947_v53 = vpop.eup %1946  ;;  %v1257_v54 = vmul.f32 %v1945_v52, %v2388_v14  ;;  %v1258_v56 = vmul.f32 %v1945_v52, %v2390_v17  ;;  %v547_v4 = vpop.f32.mrf.mxu0 }
 0x1a4   : > { %1948 = vrcp.f32 %v1695_v9  ;;  %v1028_v60 = vadd.f32 1.0, %v1947_v53  ;;  %v596_v14 = vpop.f32.mrf.mxu1  ;;  %v967_v17 = vmul.f32 0.5, %v547_v4 }
 0x1a5   : > { %1289 = vst [vmem:[%s2458_s26 + $0x80] sm:$0xff] %v1257_v54  ;;  %1950 = vtanh.f32 %v965_v62  ;;  %v968_v33 = vmul.f32 0.5, %v596_v14 }
 0x1a6   : > { %1290 = vst [vmem:[%s2458_s26 + $0x88] sm:$0xff] %v1258_v56  ;;  %v1060_v61 = vmul.f32 0.5, %v1028_v60  ;;  %1952 = vtanh.f32 %v966_v3 }
 0x1a7   : > { %1954 = vtanh.f32 %v967_v17 }
 0x1a8   : > { %1092 = vst [vmem:[%s2418_s9 + $0xd8] sm:$0xff] %v1060_v61 }
 0x1a9   : > { %v1193_v5 = vpop.xlane.xlu1 %1192 }
 0x1aa   : > { %v1949_v36 = vpop.eup %1948  ;;  %v1696_v7 = vadd.f32 -56.0, %v1193_v5 }
 0x1ab   : > { %v1259_v55 = vmul.f32 %v1949_v36, %v2394_v23  ;;  %v1260_v10 = vmul.f32 %v1949_v36, %v2396_v27  ;;  %v1951_v58 = vpop.eup %1950 }
 0x1ac   : > { %1956 = vrcp.f32 %v1696_v7  ;;  %v1953_v11 = vpop.eup %1952  ;;  %v1029_v12 = vadd.f32 1.0, %v1951_v58 }
 0x1ad   : > { %1291 = vst [vmem:[%s2458_s26 + $0x90] sm:$0xff] %v1259_v55  ;;  %1958 = vtanh.f32 %v968_v33  ;;  %v1030_v23 = vadd.f32 1.0, %v1953_v11  ;;  %v1955_v18 = vpop.eup %1954 }
 0x1ae   : > { %1292 = vst [vmem:[%s2458_s26 + $0x98] sm:$0xff] %v1260_v10  ;;  %v1061_v21 = vmul.f32 0.5, %v1029_v12  ;;  %v1031_v20 = vadd.f32 1.0, %v1955_v18 }
 0x1af   : > { %v1062_v19 = vmul.f32 0.5, %v1030_v23 }
 0x1b0   : > { %1093 = vst [vmem:[%s2418_s9 + $0xe0] sm:$0xff] %v1061_v21  ;;  %v1063_v40 = vmul.f32 0.5, %v1031_v20 }
 0x1b1   : > { %v1196_v27 = vpop.xlane.xlu2 %1195  ;;  %1094 = vst [vmem:[%s2418_s9 + $0xe8] sm:$0xff] %v1062_v19 }
 0x1b2   : > { %v1957_v13 = vpop.eup %1956  ;;  %v1697_v16 = vadd.f32 -56.0, %v1196_v27  ;;  %1095 = vst [vmem:[%s2418_s9 + $0xf0] sm:$0xff] %v1063_v40 }
 0x1b3   : > { %v1959_v24 = vpop.eup %1958  ;;  %v1261_v26 = vmul.f32 %v1957_v13, %v2400_v38  ;;  %v1262_v29 = vmul.f32 %v1957_v13, %v2402_v42 }
 0x1b4   : > { %1960 = vrcp.f32 %v1697_v16  ;;  %v1032_v63 = vadd.f32 1.0, %v1959_v24 }
 0x1b5   : > { %1293 = vst [vmem:[%s2458_s26 + $0xa0] sm:$0xff] %v1261_v26 }
 0x1b6   : > { %1294 = vst [vmem:[%s2458_s26 + $0xa8] sm:$0xff] %v1262_v29  ;;  %v1064_v2 = vmul.f32 0.5, %v1032_v63 }
 0x1b8   : > { %1096 = vst [vmem:[%s2418_s9 + $0xf8] sm:$0xff] %v1064_v2 }
 0x1b9   : > { %v1199_v30 = vpop.xlane.xlu0 %1198 }
 0x1ba   : > { %1997 = shalt.err (!%p1994_p3)
}
 0x1bb   : > { %s2066_s9 = smov 256   ;;  %s2067_s8 = smov 16   ;;  %v1961_v38 = vpop.eup %1960  ;;  %v1698_v42 = vadd.f32 -56.0, %v1199_v30 }
 0x1bc   : > { %1764 = dma.vmem_to_hbm [thread:$0]  (%p2136_p5), %s1325_s11, 4096, %s1327_s12, %s1306_s13, %s2066_s9, %s2066_s9, %s2067_s8   ;;  %v1263_v43 = vmul.f32 %v1961_v38, %v2410_v59  ;;  %v1264_v31 = vmul.f32 %v1961_v38, %v2412_v0 }
 0x1bd   : > { %1962 = vrcp.f32 %v1698_v42  ;;  %s1341_s12 = scalar_lea.hbm %s2607_s5, %s1761_s30  ;;  %s1342_s13 = sshll.u32 %s2458_s26, 4  ;;  %s1343_s13 = int_to_ptr.vmem [resolvable:$true] %s1342_s13 }
 0x1be   : > { %1295 = vst [vmem:[%s2458_s26 + $0xb0] sm:$0xff] %v1263_v43  ;;  %s1344_s14 = sshll.u32 %s1341_s12, 4  ;;  %s1311_s15 = scalar_lea.sflag [#allocation5], %s2405_s17  ;;  %s1345_s14 = int_to_ptr.hbm [resolvable:$true] %s1344_s14 }
 0x1bf   : > { %1296 = vst [vmem:[%s2458_s26 + $0xb8] sm:$0xff] %v1264_v31  ;;  %s2012_s16 = sshra.s32 %s1345_s14, 4  ;;  %s2018_s25 = scalar_lea.hbm %s2607_s5, 512  ;;  %s2013_s16 = int_to_ptr.hbm [resolvable:$true] %s2012_s16 }
 0x1c0   : > { %s2014_s22 = scalar_lea.hbm %s2013_s16, 256  ;;  %p2019_p9 = scmp.lt.s32.totalorder %s2013_s16, %s2607_s5 }
 0x1c1   : > { %v1202_v34 = vpop.xlane.xlu1 %1201  ;;  %p2015_p4 = scmp.ne.s32.totalorder %s2013_s16, %s2014_s22  ;;  %p2020_p10 = scmp.lt.s32.totalorder %s2018_s25, %s2014_s22 }
 0x1c2   : > { %v1699_v41 = vadd.f32 -56.0, %v1202_v34 }
 0x1c3   : > { %v1963_v37 = vpop.eup %1962  ;;  %p2016_p7 = pnand %p2015_p4, %p2136_p5  ;;  %p2021_p11 = por %p2020_p10, %p2019_p9 }
 0x1c4   : > { %v1265_v44 = vmul.f32 %v1963_v37, %v2422_v15  ;;  %v1266_v45 = vmul.f32 %v1963_v37, %v2424_v22  ;;  %1964 = vrcp.f32 %v1699_v41 }
 0x1c5   : > { %p2017_p8 = pneg %p2016_p7 }
 0x1c6   : > { %1297 = vst [vmem:[%s2458_s26 + $0xc0] sm:$0xff] %v1265_v44 }
 0x1c7   : > { %1298 = vst [vmem:[%s2458_s26 + $0xc8] sm:$0xff] %v1266_v45  ;;  %p2022_p12 = pnand %p2021_p11, %p2017_p8 }
 0x1c9   : > { %v1205_v59 = vpop.xlane.xlu2 %1204 }
 0x1ca   : > { %v1965_v0 = vpop.eup %1964  ;;  %v1700_v47 = vadd.f32 -56.0, %v1205_v59 }
 0x1cb   : > { %v1267_v25 = vmul.f32 %v1965_v0, %v2430_v39  ;;  %v1268_v49 = vmul.f32 %v1965_v0, %v2432_v46 }
 0x1cc   : > { %1966 = vrcp.f32 %v1700_v47 }
 0x1cd   : > { %1299 = vst [vmem:[%s2458_s26 + $0xd0] sm:$0xff] %v1267_v25 }
 0x1ce   : > { %1300 = vst [vmem:[%s2458_s26 + $0xd8] sm:$0xff] %v1268_v49 }
 0x1d1   : > { %v1208_v15 = vpop.xlane.xlu0 %1207 }
 0x1d2   : > { %v1967_v22 = vpop.eup %1966  ;;  %v1701_v28 = vadd.f32 -56.0, %v1208_v15 }
 0x1d3   : > { %v1269_v50 = vmul.f32 %v1967_v22, %v2436_v1  ;;  %v1270_v6 = vmul.f32 %v1967_v22, %v2438_v8 }
 0x1d4   : > { %1968 = vrcp.f32 %v1701_v28 }
 0x1d5   : > { %1301 = vst [vmem:[%s2458_s26 + $0xe0] sm:$0xff] %v1269_v50 }
 0x1d6   : > { %1302 = vst [vmem:[%s2458_s26 + $0xe8] sm:$0xff] %v1270_v6 }
 0x1da   : > { %v1969_v39 = vpop.eup %1968 }
 0x1db   : > { %v1271_v46 = vmul.f32 %v1969_v39, %v2446_v32  ;;  %v1272_v52 = vmul.f32 %v1969_v39, %v2448_v35 }
 0x1dd   : > { %1303 = vst [vmem:[%s2458_s26 + $0xf0] sm:$0xff] %v1271_v46 }
 0x1de   : > { %1304 = vst [vmem:[%s2458_s26 + $0xf8] sm:$0xff] %v1272_v52 }
 0x1df   : > { %2025 = shalt.err (!%p2022_p12)
}
 0x1e0   : > { %1765 = dma.vmem_to_hbm [thread:$0]  (%p2136_p5), %s1343_s13, 4096, %s1345_s14, %s1311_s15, %s2066_s9, %s2066_s9, %s2067_s8  }
 0x1e1 PF: > { %p1775_p13 = scmp.ge.s32.totalorder %s2064_s21, 2  ;;  %s1359_s17 = sand.u32 1, %s2052_s18  }
 0x1e2   : > { %s1360_s26 = scalar_lea.sflag [#allocation3], %s1359_s17 }
 0x1e3   : > { %p1769_p0 = pnand %p1775_p13, %p2140_p6 }
 0x1e5   : > { %p1770_p1 = pneg %p1769_p0 }
 0x1e7   : > { %2043 = dma.done.wait (%p1770_p1), %s1360_s26, 4096  }
 0x1e8   : > { %2045 = vsyncadd (%p1770_p1), %s1360_s26, 4294963200  ;;  %s1370_s10 = scalar_lea.sflag [#allocation5], %s1359_s17 }
 0x1e9   : > { %2047 = dma.done.wait (%p1770_p1), %s1370_s10, 4096  }
 0x1ea   : > { %2049 = vsyncadd (%p1770_p1), %s1370_s10, 4294963200  ;;  %p19_p5 = scmp.ge.s32.totalorder %s2123_s24, 4   ;;  %s2610_s18 = smov %s2056_s19 }
 0x1eb   : > { %s2611_s19 = smov %s2060_s20  ;;  %s2612_s20 = smov %s2134_s27 }
 0x1ec   : > { %s2613_s21 = smov %s2123_s24  ;;  %21 = sbr.rel (!%p19_p5) target bundleno = 5 (0x5), region = 91 }
 0x1f1   :  { %1376 = vsyncpa [#allocation3], 1 }
 0x1f2   :  { %1378 = vsyncpa [#allocation3 + $0x1], 1 }
 0x1f3   :  { %1379 = vsyncpa [#allocation5], 1 }
 0x1f4   :  { %1381 = vsyncpa [#allocation5 + $0x1], 1 }

</bundles_post_ra>
